<compile_context>
chip_gen: v7x
topology: tpu7x:2x2x1
jax: 0.10.0
libtpu: 0.0.40
codegen_flags: <defaults>
</compile_context>

<pallas_src>
import jax
import jax.numpy as jnp
from jax.experimental import pallas as pl
from jax.experimental.pallas import tpu as pltpu

LANES = 128

_COMPILER_PARAMS = pltpu.CompilerParams(
    dimension_semantics=("parallel",),
    vmem_limit_bytes=32 * 1024 * 1024,
)


def _round_up(n, m):
    return ((n + m - 1) // m) * m


def _row_tiling(rows, tm_max):
    """Row tile (multiple of 8), grid size (>=2 when possible), padded rows."""
    tm = min(tm_max, _round_up(pl.cdiv(rows, 2), 8))
    grid = pl.cdiv(rows, tm)
    return tm, grid, grid * tm


# ---------------------------------------------------------------------------
# XLA glue: im2col arranged by 2x2-pool quadrant, rows = B * pooled positions
# ---------------------------------------------------------------------------
def im2col_pool_quadrants(x_nhwc, kh, kw):
    """cols[hh, ww, b*Hp*Wp + i*Wp + j, :] is the (kh,kw) patch feeding conv
    output position (2i+hh, 2j+ww) of image b.  K is ordered (kh, kw, Cin),
    matching a conv weight flattened from HWIO layout.  Assumes Ho, Wo even
    (true for 32x32 inputs with k=5)."""
    B, H, W, C = x_nhwc.shape
    Ho, Wo = H - kh + 1, W - kw + 1
    Hp, Wp = Ho // 2, Wo // 2
    slices = [x_nhwc[:, di:di + Ho, dj:dj + Wo, :]
              for di in range(kh) for dj in range(kw)]
    p = jnp.stack(slices, axis=3)                     # (B, Ho, Wo, kh*kw, C)
    p = p.reshape(B, Ho, Wo, kh * kw * C)             # K order = (kh, kw, Cin)
    p = p.reshape(B, Hp, 2, Wp, 2, kh * kw * C)
    p = jnp.transpose(p, (2, 4, 0, 1, 3, 5))          # (hh, ww, B, Hp, Wp, K)
    return p.reshape(2, 2, B * Hp * Wp, kh * kw * C), (Hp, Wp)


# ---------------------------------------------------------------------------
# Pallas kernels
# ---------------------------------------------------------------------------
def _conv_pool_kernel(cols_ref, w_ref, b_ref, o_ref):
    """Fused conv-as-matmul + bias + relu + 2x2 max-pool over a row tile.

    cols_ref: (2, 2, TM, K) bf16   w_ref: (K, 128) bf16   b_ref: (1, 128) f32
    o_ref:    (TM, 128) bf16       rows = flattened batch*pooled positions
    """
    w = w_ref[...]

    def quadrant(hh, ww):
        return jnp.dot(cols_ref[hh, ww], w, preferred_element_type=jnp.float32)

    # relu(max(q)+b) == pool(relu(q+b)) since relu/+b are monotone.
    y = jnp.maximum(jnp.maximum(quadrant(0, 0), quadrant(0, 1)),
                    jnp.maximum(quadrant(1, 0), quadrant(1, 1)))
    o_ref[...] = jnp.maximum(y + b_ref[...], 0.0).astype(o_ref.dtype)


def conv_relu_pool(cols, w_pad, b_pad, tm_max=512):
    """cols: (2, 2, BP, K) bf16 -> (BP, 128) bf16."""
    _, _, bp, K = cols.shape
    C = w_pad.shape[1]
    tm, grid, bp_pad = _row_tiling(bp, tm_max)
    if bp_pad != bp:
        cols = jnp.pad(cols, ((0, 0), (0, 0), (0, bp_pad - bp), (0, 0)))
    out = pl.pallas_call(
        _conv_pool_kernel,
        out_shape=jax.ShapeDtypeStruct((bp_pad, C), jnp.bfloat16),
        grid=(grid,),
        in_specs=[
            pl.BlockSpec((2, 2, tm, K), lambda i: (0, 0, i, 0)),
            pl.BlockSpec((K, C), lambda i: (0, 0)),    # resident weight
            pl.BlockSpec((1, C), lambda i: (0, 0)),    # resident bias
        ],
        out_specs=pl.BlockSpec((tm, C), lambda i: (i, 0)),
        compiler_params=_COMPILER_PARAMS,
    )(cols, w_pad, b_pad)
    return out[:bp]


def _mlp_softmax_kernel(x_ref, w1_ref, b1_ref, w2_ref, b2_ref, w3_ref, b3_ref,
                        o_ref):
    h = jnp.dot(x_ref[...], w1_ref[...], preferred_element_type=jnp.float32)
    h = jnp.maximum(h + b1_ref[...], 0.0).astype(jnp.bfloat16)
    h = jnp.dot(h, w2_ref[...], preferred_element_type=jnp.float32)
    h = jnp.maximum(h + b2_ref[...], 0.0).astype(jnp.bfloat16)
    logits = jnp.dot(h, w3_ref[...], preferred_element_type=jnp.float32)
    logits = logits + b3_ref[...]          # padded lanes carry -1e30 bias
    m = jnp.max(logits, axis=-1, keepdims=True)
    e = jnp.exp(logits - m)
    s = jnp.sum(e, axis=-1, keepdims=True)
    inv = pl.reciprocal(s, approx=True)
    inv = inv * (2.0 - s * inv)            # one Newton step -> near-exact
    o_ref[...] = e * inv


def mlp_softmax(x, w1, b1, w2, b2, w3, b3, tb_max=256):
    """x: (B, 400) bf16; lane-padded weights/biases; -> (B, A_pad) f32."""
    B, K = x.shape
    H1, H2, A = w1.shape[1], w2.shape[1], w3.shape[1]
    tb, grid, b_rows = _row_tiling(B, tb_max)
    if b_rows != B:
        x = jnp.pad(x, ((0, b_rows - B), (0, 0)))
    out = pl.pallas_call(
        _mlp_softmax_kernel,
        out_shape=jax.ShapeDtypeStruct((b_rows, A), jnp.float32),
        grid=(grid,),
        in_specs=[
            pl.BlockSpec((tb, K), lambda i: (i, 0)),
            pl.BlockSpec((K, H1), lambda i: (0, 0)),
            pl.BlockSpec((1, H1), lambda i: (0, 0)),
            pl.BlockSpec((H1, H2), lambda i: (0, 0)),
            pl.BlockSpec((1, H2), lambda i: (0, 0)),
            pl.BlockSpec((H2, A), lambda i: (0, 0)),
            pl.BlockSpec((1, A), lambda i: (0, 0)),
        ],
        out_specs=pl.BlockSpec((tb, A), lambda i: (i, 0)),
        compiler_params=_COMPILER_PARAMS,
    )(x, w1, b1, w2, b2, w3, b3)
    return out[:B]


# ---------------------------------------------------------------------------
# Parameters (lane-padded, matmul operands in bf16, biases in f32)
# ---------------------------------------------------------------------------
def _pad2(a, rows, cols, dtype, fill=0.0):
    out = jnp.full((rows, cols), fill, dtype)
    return out.at[:a.shape[0], :a.shape[1]].set(a.astype(dtype))


def init_params(key, action_num=16):
    ks = jax.random.split(key, 10)
    s = 0.1
    a_pad = _round_up(max(action_num, 1), LANES)
    cw1 = s * jax.random.normal(ks[0], (5 * 5 * 3, 6), jnp.float32)
    cb1 = s * jax.random.normal(ks[1], (6,), jnp.float32)
    cw2 = s * jax.random.normal(ks[2], (5 * 5 * 6, 16), jnp.float32)
    cb2 = s * jax.random.normal(ks[3], (16,), jnp.float32)
    fw1 = s * jax.random.normal(ks[4], (5 * 5 * 16, 120), jnp.float32)
    fb1 = s * jax.random.normal(ks[5], (120,), jnp.float32)
    fw2 = s * jax.random.normal(ks[6], (120, 84), jnp.float32)
    fb2 = s * jax.random.normal(ks[7], (84,), jnp.float32)
    fw3 = s * jax.random.normal(ks[8], (84, action_num), jnp.float32)
    fb3 = s * jax.random.normal(ks[9], (action_num,), jnp.float32)
    return {
        # Conv weights: rows ordered (kh, kw, Cin) (== torch w.permute(2,3,1,0)
        # flattened); columns zero-padded to 128 lanes -> lane-dense stores.
        "cw1p": _pad2(cw1, 5 * 5 * 3, LANES, jnp.bfloat16),
        "cb1p": _pad2(cb1.reshape(1, -1), 1, LANES, jnp.float32),
        "cw2p": _pad2(cw2, 5 * 5 * 6, LANES, jnp.bfloat16),
        "cb2p": _pad2(cb2.reshape(1, -1), 1, LANES, jnp.float32),
        # fc1 rows ordered (H, W, C) -- a fixed row permutation of torch's
        # (C, H, W) flatten -- so no runtime transpose before the MLP.
        # TODO(synk): apply that row permutation when importing real torch weights.
        "fw1p": _pad2(fw1, 5 * 5 * 16, LANES, jnp.bfloat16),
        "fb1p": _pad2(fb1.reshape(1, -1), 1, LANES, jnp.float32),
        "fw2p": _pad2(fw2, LANES, LANES, jnp.bfloat16),
        "fb2p": _pad2(fb2.reshape(1, -1), 1, LANES, jnp.float32),
        "fw3p": _pad2(fw3, LANES, a_pad, jnp.bfloat16),
        # Padded logit lanes get a huge negative bias so softmax ignores them.
        "fb3p": _pad2(fb3.reshape(1, -1), 1, a_pad, jnp.float32, fill=-1e30),
    }


# ---------------------------------------------------------------------------
# PolicyNet_Cov forward
# ---------------------------------------------------------------------------
def policy_net_cov_forward(x_nchw, params, action_num):
    B = x_nchw.shape[0]
    x = jnp.transpose(x_nchw, (0, 2, 3, 1)).astype(jnp.bfloat16)    # NHWC bf16

    # conv1 (3 -> 6, k=5) + bias + relu + 2x2 pool, fused, row-tiled over B*196
    cols1, (hp1, wp1) = im2col_pool_quadrants(x, 5, 5)              # (2,2,B*196,75)
    y1 = conv_relu_pool(cols1, params["cw1p"], params["cb1p"])      # (B*196,128) bf16
    y1 = y1.reshape(B, hp1, wp1, LANES)[..., :6]                    # (B,14,14,6)

    # conv2 (6 -> 16, k=5) + bias + relu + 2x2 pool, fused, row-tiled over B*25
    cols2, (hp2, wp2) = im2col_pool_quadrants(y1, 5, 5)             # (2,2,B*25,150)
    y2 = conv_relu_pool(cols2, params["cw2p"], params["cb2p"])      # (B*25,128) bf16

    feat = y2[:, :16].reshape(B, hp2 * wp2 * 16)                    # (B,400), (H,W,C)

    probs = mlp_softmax(feat, params["fw1p"], params["fb1p"],
                        params["fw2p"], params["fb2p"],
                        params["fw3p"], params["fb3p"])             # (B, A_pad) f32
    return probs[:, :action_num]


# ---------------------------------------------------------------------------
# Pure-JAX reference (same math: bf16 matmul inputs, f32 accumulation)
# ---------------------------------------------------------------------------
def reference_forward(x_nchw, params, action_num):
    x = jnp.transpose(x_nchw, (0, 2, 3, 1)).astype(jnp.bfloat16)
    w1 = params["cw1p"][:, :6].reshape(5, 5, 3, 6)
    b1 = params["cb1p"][0, :6]
    w2 = params["cw2p"][:, :16].reshape(5, 5, 6, 16)
    b2 = params["cb2p"][0, :16]

    def conv(v, w):
        return jax.lax.conv_general_dilated(
            v, w, window_strides=(1, 1), padding="VALID",
            dimension_numbers=("NHWC", "HWIO", "NHWC"),
            preferred_element_type=jnp.float32)

    def pool(v):
        return jax.lax.reduce_window(v, -jnp.inf, jax.lax.max,
                                     (1, 2, 2, 1), (1, 2, 2, 1), "VALID")

    y = pool(jax.nn.relu(conv(x, w1) + b1)).astype(jnp.bfloat16)
    y = pool(jax.nn.relu(conv(y, w2) + b2)).astype(jnp.bfloat16)
    feat = y.reshape(y.shape[0], -1)                     # (H, W, C) order
    h = jax.nn.relu(jnp.dot(feat, params["fw1p"][:, :120],
                            preferred_element_type=jnp.float32)
                    + params["fb1p"][0, :120]).astype(jnp.bfloat16)
    h = jax.nn.relu(jnp.dot(h, params["fw2p"][:120, :84],
                            preferred_element_type=jnp.float32)
                    + params["fb2p"][0, :84]).astype(jnp.bfloat16)
    logits = jnp.dot(h, params["fw3p"][:84, :action_num],
                     preferred_element_type=jnp.float32) + params["fb3p"][0, :action_num]
    return jax.nn.softmax(logits, axis=-1)


if __name__ == "__main__":
    key = jax.random.PRNGKey(0)
    k_params, k_x = jax.random.split(key)

    action_num = 16
    params = init_params(k_params, action_num=action_num)

    # 32x32 spatial size is what fc1 (16*5*5 features) implies.
    x = jax.random.normal(k_x, (2, 3, 32, 32), jnp.float32)

    fwd = jax.jit(lambda xs: policy_net_cov_forward(xs, params, action_num))
    out = jax.block_until_ready(fwd(x))

    assert out.shape == (2, action_num)
    # softmax rows sum to ~1 (Newton-refined reciprocal -> tight tolerance)
    assert bool(jnp.all(jnp.abs(jnp.sum(out, axis=-1) - 1.0) < 1e-3))
    # match the pure-JAX reference
    ref = reference_forward(x, params, action_num)
    assert bool(jnp.allclose(out, ref, rtol=2e-2, atol=2e-3)), \
        float(jnp.max(jnp.abs(out - ref)))
    print("KERNEL_OK")
</pallas_src>

<mosaic_0001>
module attributes {stable_mosaic.version = 11 : i64} {
  func.func @_conv_pool_kernel(%arg0: i32, %arg1: memref<2x2x200x75xbf16, #tpu.memory_space<vmem>>, %arg2: memref<75x128xbf16, #tpu.memory_space<vmem>>, %arg3: memref<1x128xf32, #tpu.memory_space<vmem>>, %arg4: memref<200x128xbf16, #tpu.memory_space<vmem>>) attributes {dimension_semantics = [#tpu.dimension_semantics<parallel>], iteration_bounds = array<i64: 2>, scalar_prefetch = 0 : i64, scratch_operands = 0 : i64, tpu.core_type = #tpu.core_type<tc>, window_params = [{transform_indices = @transform_0, window_bounds = array<i64: 2, 2, 200, 75>}, {pipeline_mode = #tpu.pipeline_mode<synchronous>, transform_indices = @transform_1, window_bounds = array<i64: 75, 128>}, {pipeline_mode = #tpu.pipeline_mode<synchronous>, transform_indices = @transform_2, window_bounds = array<i64: 1, 128>}, {transform_indices = @transform_3, window_bounds = array<i64: 200, 128>}]} {
    %c0 = arith.constant 0 : index
    %c0_0 = arith.constant 0 : index
    %0 = vector.load %arg2[%c0, %c0_0] : memref<75x128xbf16, #tpu.memory_space<vmem>>, vector<75x128xbf16>
    %c0_1 = arith.constant 0 : index
    %c0_2 = arith.constant 0 : index
    %c0_3 = arith.constant 0 : index
    %c0_4 = arith.constant 0 : index
    %1 = vector.load %arg1[%c0_1, %c0_2, %c0_3, %c0_4] : memref<2x2x200x75xbf16, #tpu.memory_space<vmem>>, vector<1x1x200x75xbf16>
    %2 = vector.shape_cast %1 : vector<1x1x200x75xbf16> to vector<200x75xbf16>
    %cst = arith.constant dense<0.000000e+00> : vector<200x128xf32>
    %3 = tpu.matmul %2, %0, %cst {dimension_numbers = #tpu.dot_dimension_numbers<[1], [0], [0], [1], [0, 0, 1, 1], [], []>} : vector<200x75xbf16>, vector<75x128xbf16>, vector<200x128xf32> -> vector<200x128xf32>
    %c0_5 = arith.constant 0 : index
    %c1 = arith.constant 1 : index
    %c0_6 = arith.constant 0 : index
    %c0_7 = arith.constant 0 : index
    %4 = vector.load %arg1[%c0_5, %c1, %c0_6, %c0_7] : memref<2x2x200x75xbf16, #tpu.memory_space<vmem>>, vector<1x1x200x75xbf16>
    %5 = vector.shape_cast %4 : vector<1x1x200x75xbf16> to vector<200x75xbf16>
    %cst_8 = arith.constant dense<0.000000e+00> : vector<200x128xf32>
    %6 = tpu.matmul %5, %0, %cst_8 {dimension_numbers = #tpu.dot_dimension_numbers<[1], [0], [0], [1], [0, 0, 1, 1], [], []>} : vector<200x75xbf16>, vector<75x128xbf16>, vector<200x128xf32> -> vector<200x128xf32>
    %7 = arith.maximumf %3, %6 : vector<200x128xf32>
    %c1_9 = arith.constant 1 : index
    %c0_10 = arith.constant 0 : index
    %c0_11 = arith.constant 0 : index
    %c0_12 = arith.constant 0 : index
    %8 = vector.load %arg1[%c1_9, %c0_10, %c0_11, %c0_12] : memref<2x2x200x75xbf16, #tpu.memory_space<vmem>>, vector<1x1x200x75xbf16>
    %9 = vector.shape_cast %8 : vector<1x1x200x75xbf16> to vector<200x75xbf16>
    %cst_13 = arith.constant dense<0.000000e+00> : vector<200x128xf32>
    %10 = tpu.matmul %9, %0, %cst_13 {dimension_numbers = #tpu.dot_dimension_numbers<[1], [0], [0], [1], [0, 0, 1, 1], [], []>} : vector<200x75xbf16>, vector<75x128xbf16>, vector<200x128xf32> -> vector<200x128xf32>
    %c1_14 = arith.constant 1 : index
    %c1_15 = arith.constant 1 : index
    %c0_16 = arith.constant 0 : index
    %c0_17 = arith.constant 0 : index
    %11 = vector.load %arg1[%c1_14, %c1_15, %c0_16, %c0_17] : memref<2x2x200x75xbf16, #tpu.memory_space<vmem>>, vector<1x1x200x75xbf16>
    %12 = vector.shape_cast %11 : vector<1x1x200x75xbf16> to vector<200x75xbf16>
    %cst_18 = arith.constant dense<0.000000e+00> : vector<200x128xf32>
    %13 = tpu.matmul %12, %0, %cst_18 {dimension_numbers = #tpu.dot_dimension_numbers<[1], [0], [0], [1], [0, 0, 1, 1], [], []>} : vector<200x75xbf16>, vector<75x128xbf16>, vector<200x128xf32> -> vector<200x128xf32>
    %14 = arith.maximumf %10, %13 : vector<200x128xf32>
    %15 = arith.maximumf %7, %14 : vector<200x128xf32>
    %c0_19 = arith.constant 0 : index
    %c0_20 = arith.constant 0 : index
    %16 = vector.load %arg3[%c0_19, %c0_20] : memref<1x128xf32, #tpu.memory_space<vmem>>, vector<1x128xf32>
    %17 = vector.broadcast %16 : vector<1x128xf32> to vector<200x128xf32>
    %18 = arith.addf %15, %17 : vector<200x128xf32>
    %cst_21 = arith.constant 0.000000e+00 : f32
    %19 = vector.broadcast %cst_21 : f32 to vector<200x128xf32>
    %20 = arith.maximumf %18, %19 : vector<200x128xf32>
    %21 = arith.truncf %20 : vector<200x128xf32> to vector<200x128xbf16>
    %c0_22 = arith.constant 0 : index
    %c0_23 = arith.constant 0 : index
    %22 = vector.load %arg4[%c0_22, %c0_23] : memref<200x128xbf16, #tpu.memory_space<vmem>>, vector<200x128xbf16>
    tpu.vector_store %arg4[%c0_22, %c0_23], %21 {strides = array<i32>} : memref<200x128xbf16, #tpu.memory_space<vmem>>, vector<200x128xbf16>,
    return
  }
  func.func @transform_0(%arg0: i32) -> (i32, i32, i32, i32) {
    %c0_i32 = arith.constant 0 : i32
    %c0_i32_0 = arith.constant 0 : i32
    %c0_i32_1 = arith.constant 0 : i32
    %c0_i32_2 = arith.constant 0 : i32
    return %c0_i32, %c0_i32_0, %arg0, %c0_i32_1 : i32, i32, i32, i32
  }
  func.func @transform_1(%arg0: i32) -> (i32, i32) {
    %c0_i32 = arith.constant 0 : i32
    %c0_i32_0 = arith.constant 0 : i32
    %c0_i32_1 = arith.constant 0 : i32
    return %c0_i32, %c0_i32_0 : i32, i32
  }
  func.func @transform_2(%arg0: i32) -> (i32, i32) {
    %c0_i32 = arith.constant 0 : i32
    %c0_i32_0 = arith.constant 0 : i32
    %c0_i32_1 = arith.constant 0 : i32
    return %c0_i32, %c0_i32_0 : i32, i32
  }
  func.func @transform_3(%arg0: i32) -> (i32, i32) {
    %c0_i32 = arith.constant 0 : i32
    %c0_i32_0 = arith.constant 0 : i32
    return %arg0, %c0_i32 : i32, i32
  }
}

module attributes {stable_mosaic.version = 11 : i64} {
  func.func @_conv_pool_kernel(%arg0: i32, %arg1: memref<2x2x32x150xbf16, #tpu.memory_space<vmem>>, %arg2: memref<150x128xbf16, #tpu.memory_space<vmem>>, %arg3: memref<1x128xf32, #tpu.memory_space<vmem>>, %arg4: memref<32x128xbf16, #tpu.memory_space<vmem>>) attributes {dimension_semantics = [#tpu.dimension_semantics<parallel>], iteration_bounds = array<i64: 2>, scalar_prefetch = 0 : i64, scratch_operands = 0 : i64, tpu.core_type = #tpu.core_type<tc>, window_params = [{transform_indices = @transform_0, window_bounds = array<i64: 2, 2, 32, 150>}, {pipeline_mode = #tpu.pipeline_mode<synchronous>, transform_indices = @transform_1, window_bounds = array<i64: 150, 128>}, {pipeline_mode = #tpu.pipeline_mode<synchronous>, transform_indices = @transform_2, window_bounds = array<i64: 1, 128>}, {transform_indices = @transform_3, window_bounds = array<i64: 32, 128>}]} {
    %c0 = arith.constant 0 : index
    %c0_0 = arith.constant 0 : index
    %0 = vector.load %arg2[%c0, %c0_0] : memref<150x128xbf16, #tpu.memory_space<vmem>>, vector<150x128xbf16>
    %c0_1 = arith.constant 0 : index
    %c0_2 = arith.constant 0 : index
    %c0_3 = arith.constant 0 : index
    %c0_4 = arith.constant 0 : index
    %1 = vector.load %arg1[%c0_1, %c0_2, %c0_3, %c0_4] : memref<2x2x32x150xbf16, #tpu.memory_space<vmem>>, vector<1x1x32x150xbf16>
    %2 = vector.shape_cast %1 : vector<1x1x32x150xbf16> to vector<32x150xbf16>
    %cst = arith.constant dense<0.000000e+00> : vector<32x128xf32>
    %3 = tpu.matmul %2, %0, %cst {dimension_numbers = #tpu.dot_dimension_numbers<[1], [0], [0], [1], [0, 0, 1, 1], [], []>} : vector<32x150xbf16>, vector<150x128xbf16>, vector<32x128xf32> -> vector<32x128xf32>
    %c0_5 = arith.constant 0 : index
    %c1 = arith.constant 1 : index
    %c0_6 = arith.constant 0 : index
    %c0_7 = arith.constant 0 : index
    %4 = vector.load %arg1[%c0_5, %c1, %c0_6, %c0_7] : memref<2x2x32x150xbf16, #tpu.memory_space<vmem>>, vector<1x1x32x150xbf16>
    %5 = vector.shape_cast %4 : vector<1x1x32x150xbf16> to vector<32x150xbf16>
    %cst_8 = arith.constant dense<0.000000e+00> : vector<32x128xf32>
    %6 = tpu.matmul %5, %0, %cst_8 {dimension_numbers = #tpu.dot_dimension_numbers<[1], [0], [0], [1], [0, 0, 1, 1], [], []>} : vector<32x150xbf16>, vector<150x128xbf16>, vector<32x128xf32> -> vector<32x128xf32>
    %7 = arith.maximumf %3, %6 : vector<32x128xf32>
    %c1_9 = arith.constant 1 : index
    %c0_10 = arith.constant 0 : index
    %c0_11 = arith.constant 0 : index
    %c0_12 = arith.constant 0 : index
    %8 = vector.load %arg1[%c1_9, %c0_10, %c0_11, %c0_12] : memref<2x2x32x150xbf16, #tpu.memory_space<vmem>>, vector<1x1x32x150xbf16>
    %9 = vector.shape_cast %8 : vector<1x1x32x150xbf16> to vector<32x150xbf16>
    %cst_13 = arith.constant dense<0.000000e+00> : vector<32x128xf32>
    %10 = tpu.matmul %9, %0, %cst_13 {dimension_numbers = #tpu.dot_dimension_numbers<[1], [0], [0], [1], [0, 0, 1, 1], [], []>} : vector<32x150xbf16>, vector<150x128xbf16>, vector<32x128xf32> -> vector<32x128xf32>
    %c1_14 = arith.constant 1 : index
    %c1_15 = arith.constant 1 : index
    %c0_16 = arith.constant 0 : index
    %c0_17 = arith.constant 0 : index
    %11 = vector.load %arg1[%c1_14, %c1_15, %c0_16, %c0_17] : memref<2x2x32x150xbf16, #tpu.memory_space<vmem>>, vector<1x1x32x150xbf16>
    %12 = vector.shape_cast %11 : vector<1x1x32x150xbf16> to vector<32x150xbf16>
    %cst_18 = arith.constant dense<0.000000e+00> : vector<32x128xf32>
    %13 = tpu.matmul %12, %0, %cst_18 {dimension_numbers = #tpu.dot_dimension_numbers<[1], [0], [0], [1], [0, 0, 1, 1], [], []>} : vector<32x150xbf16>, vector<150x128xbf16>, vector<32x128xf32> -> vector<32x128xf32>
    %14 = arith.maximumf %10, %13 : vector<32x128xf32>
    %15 = arith.maximumf %7, %14 : vector<32x128xf32>
    %c0_19 = arith.constant 0 : index
    %c0_20 = arith.constant 0 : index
    %16 = vector.load %arg3[%c0_19, %c0_20] : memref<1x128xf32, #tpu.memory_space<vmem>>, vector<1x128xf32>
    %17 = vector.broadcast %16 : vector<1x128xf32> to vector<32x128xf32>
    %18 = arith.addf %15, %17 : vector<32x128xf32>
    %cst_21 = arith.constant 0.000000e+00 : f32
    %19 = vector.broadcast %cst_21 : f32 to vector<32x128xf32>
    %20 = arith.maximumf %18, %19 : vector<32x128xf32>
    %21 = arith.truncf %20 : vector<32x128xf32> to vector<32x128xbf16>
    %c0_22 = arith.constant 0 : index
    %c0_23 = arith.constant 0 : index
    %22 = vector.load %arg4[%c0_22, %c0_23] : memref<32x128xbf16, #tpu.memory_space<vmem>>, vector<32x128xbf16>
    tpu.vector_store %arg4[%c0_22, %c0_23], %21 {strides = array<i32>} : memref<32x128xbf16, #tpu.memory_space<vmem>>, vector<32x128xbf16>,
    return
  }
  func.func @transform_0(%arg0: i32) -> (i32, i32, i32, i32) {
    %c0_i32 = arith.constant 0 : i32
    %c0_i32_0 = arith.constant 0 : i32
    %c0_i32_1 = arith.constant 0 : i32
    %c0_i32_2 = arith.constant 0 : i32
    return %c0_i32, %c0_i32_0, %arg0, %c0_i32_1 : i32, i32, i32, i32
  }
  func.func @transform_1(%arg0: i32) -> (i32, i32) {
    %c0_i32 = arith.constant 0 : i32
    %c0_i32_0 = arith.constant 0 : i32
    %c0_i32_1 = arith.constant 0 : i32
    return %c0_i32, %c0_i32_0 : i32, i32
  }
  func.func @transform_2(%arg0: i32) -> (i32, i32) {
    %c0_i32 = arith.constant 0 : i32
    %c0_i32_0 = arith.constant 0 : i32
    %c0_i32_1 = arith.constant 0 : i32
    return %c0_i32, %c0_i32_0 : i32, i32
  }
  func.func @transform_3(%arg0: i32) -> (i32, i32) {
    %c0_i32 = arith.constant 0 : i32
    %c0_i32_0 = arith.constant 0 : i32
    return %arg0, %c0_i32 : i32, i32
  }
}

module attributes {stable_mosaic.version = 11 : i64} {
  func.func @_mlp_softmax_kernel(%arg0: i32, %arg1: memref<8x400xbf16, #tpu.memory_space<vmem>>, %arg2: memref<400x128xbf16, #tpu.memory_space<vmem>>, %arg3: memref<1x128xf32, #tpu.memory_space<vmem>>, %arg4: memref<128x128xbf16, #tpu.memory_space<vmem>>, %arg5: memref<1x128xf32, #tpu.memory_space<vmem>>, %arg6: memref<128x128xbf16, #tpu.memory_space<vmem>>, %arg7: memref<1x128xf32, #tpu.memory_space<vmem>>, %arg8: memref<8x128xf32, #tpu.memory_space<vmem>>) attributes {dimension_semantics = [#tpu.dimension_semantics<parallel>], iteration_bounds = array<i64: 1>, scalar_prefetch = 0 : i64, scratch_operands = 0 : i64, tpu.core_type = #tpu.core_type<tc>, window_params = [{transform_indices = @transform_0, window_bounds = array<i64: 8, 400>}, {pipeline_mode = #tpu.pipeline_mode<synchronous>, transform_indices = @transform_1, window_bounds = array<i64: 400, 128>}, {pipeline_mode = #tpu.pipeline_mode<synchronous>, transform_indices = @transform_2, window_bounds = array<i64: 1, 128>}, {pipeline_mode = #tpu.pipeline_mode<synchronous>, transform_indices = @transform_3, window_bounds = array<i64: 128, 128>}, {pipeline_mode = #tpu.pipeline_mode<synchronous>, transform_indices = @transform_4, window_bounds = array<i64: 1, 128>}, {pipeline_mode = #tpu.pipeline_mode<synchronous>, transform_indices = @transform_5, window_bounds = array<i64: 128, 128>}, {pipeline_mode = #tpu.pipeline_mode<synchronous>, transform_indices = @transform_6, window_bounds = array<i64: 1, 128>}, {transform_indices = @transform_7, window_bounds = array<i64: 8, 128>}]} {
    %c0 = arith.constant 0 : index
    %c0_0 = arith.constant 0 : index
    %0 = vector.load %arg1[%c0, %c0_0] : memref<8x400xbf16, #tpu.memory_space<vmem>>, vector<8x400xbf16>
    %c0_1 = arith.constant 0 : index
    %c0_2 = arith.constant 0 : index
    %1 = vector.load %arg2[%c0_1, %c0_2] : memref<400x128xbf16, #tpu.memory_space<vmem>>, vector<400x128xbf16>
    %cst = arith.constant dense<0.000000e+00> : vector<8x128xf32>
    %2 = tpu.matmul %0, %1, %cst {dimension_numbers = #tpu.dot_dimension_numbers<[1], [0], [0], [1], [0, 0, 1, 1], [], []>} : vector<8x400xbf16>, vector<400x128xbf16>, vector<8x128xf32> -> vector<8x128xf32>
    %c0_3 = arith.constant 0 : index
    %c0_4 = arith.constant 0 : index
    %3 = vector.load %arg3[%c0_3, %c0_4] : memref<1x128xf32, #tpu.memory_space<vmem>>, vector<1x128xf32>
    %4 = vector.broadcast %3 : vector<1x128xf32> to vector<8x128xf32>
    %5 = arith.addf %2, %4 : vector<8x128xf32>
    %cst_5 = arith.constant 0.000000e+00 : f32
    %6 = vector.broadcast %cst_5 : f32 to vector<8x128xf32>
    %7 = arith.maximumf %5, %6 : vector<8x128xf32>
    %8 = arith.truncf %7 : vector<8x128xf32> to vector<8x128xbf16>
    %c0_6 = arith.constant 0 : index
    %c0_7 = arith.constant 0 : index
    %9 = vector.load %arg4[%c0_6, %c0_7] : memref<128x128xbf16, #tpu.memory_space<vmem>>, vector<128x128xbf16>
    %cst_8 = arith.constant dense<0.000000e+00> : vector<8x128xf32>
    %10 = tpu.matmul %8, %9, %cst_8 {dimension_numbers = #tpu.dot_dimension_numbers<[1], [0], [0], [1], [0, 0, 1, 1], [], []>} : vector<8x128xbf16>, vector<128x128xbf16>, vector<8x128xf32> -> vector<8x128xf32>
    %c0_9 = arith.constant 0 : index
    %c0_10 = arith.constant 0 : index
    %11 = vector.load %arg5[%c0_9, %c0_10] : memref<1x128xf32, #tpu.memory_space<vmem>>, vector<1x128xf32>
    %12 = vector.broadcast %11 : vector<1x128xf32> to vector<8x128xf32>
    %13 = arith.addf %10, %12 : vector<8x128xf32>
    %cst_11 = arith.constant 0.000000e+00 : f32
    %14 = vector.broadcast %cst_11 : f32 to vector<8x128xf32>
    %15 = arith.maximumf %13, %14 : vector<8x128xf32>
    %16 = arith.truncf %15 : vector<8x128xf32> to vector<8x128xbf16>
    %c0_12 = arith.constant 0 : index
    %c0_13 = arith.constant 0 : index
    %17 = vector.load %arg6[%c0_12, %c0_13] : memref<128x128xbf16, #tpu.memory_space<vmem>>, vector<128x128xbf16>
    %cst_14 = arith.constant dense<0.000000e+00> : vector<8x128xf32>
    %18 = tpu.matmul %16, %17, %cst_14 {dimension_numbers = #tpu.dot_dimension_numbers<[1], [0], [0], [1], [0, 0, 1, 1], [], []>} : vector<8x128xbf16>, vector<128x128xbf16>, vector<8x128xf32> -> vector<8x128xf32>
    %c0_15 = arith.constant 0 : index
    %c0_16 = arith.constant 0 : index
    %19 = vector.load %arg7[%c0_15, %c0_16] : memref<1x128xf32, #tpu.memory_space<vmem>>, vector<1x128xf32>
    %20 = vector.broadcast %19 : vector<1x128xf32> to vector<8x128xf32>
    %21 = arith.addf %18, %20 : vector<8x128xf32>
    %cst_17 = arith.constant dense<0xFF800000> : vector<8xf32>
    %22 = vector.multi_reduction <maximumf>, %21, %cst_17 [1] : vector<8x128xf32> to vector<8xf32>
    %23 = vector.shape_cast %22 : vector<8xf32> to vector<8x1xf32>
    %24 = vector.broadcast %23 : vector<8x1xf32> to vector<8x128xf32>
    %25 = arith.subf %21, %24 : vector<8x128xf32>
    %26 = math.exp %25 : vector<8x128xf32>
    %cst_18 = arith.constant dense<0.000000e+00> : vector<8xf32>
    %27 = vector.multi_reduction <add>, %26, %cst_18 [1] : vector<8x128xf32> to vector<8xf32>
    %28 = vector.shape_cast %27 : vector<8xf32> to vector<8x1xf32>
    %29 = tpu.reciprocal %28 {approx = true} : vector<8x1xf32> -> vector<8x1xf32>
    %30 = arith.mulf %28, %29 : vector<8x1xf32>
    %cst_19 = arith.constant 2.000000e+00 : f32
    %31 = vector.broadcast %cst_19 : f32 to vector<8x1xf32>
    %32 = arith.subf %31, %30 : vector<8x1xf32>
    %33 = arith.mulf %29, %32 : vector<8x1xf32>
    %34 = vector.broadcast %33 : vector<8x1xf32> to vector<8x128xf32>
    %35 = arith.mulf %26, %34 : vector<8x128xf32>
    %c0_20 = arith.constant 0 : index
    %c0_21 = arith.constant 0 : index
    %36 = vector.load %arg8[%c0_20, %c0_21] : memref<8x128xf32, #tpu.memory_space<vmem>>, vector<8x128xf32>
    tpu.vector_store %arg8[%c0_20, %c0_21], %35 {strides = array<i32>} : memref<8x128xf32, #tpu.memory_space<vmem>>, vector<8x128xf32>,
    return
  }
  func.func @transform_0(%arg0: i32) -> (i32, i32) {
    %c0_i32 = arith.constant 0 : i32
    %c0_i32_0 = arith.constant 0 : i32
    return %arg0, %c0_i32 : i32, i32
  }
  func.func @transform_1(%arg0: i32) -> (i32, i32) {
    %c0_i32 = arith.constant 0 : i32
    %c0_i32_0 = arith.constant 0 : i32
    %c0_i32_1 = arith.constant 0 : i32
    return %c0_i32, %c0_i32_0 : i32, i32
  }
  func.func @transform_2(%arg0: i32) -> (i32, i32) {
    %c0_i32 = arith.constant 0 : i32
    %c0_i32_0 = arith.constant 0 : i32
    %c0_i32_1 = arith.constant 0 : i32
    return %c0_i32, %c0_i32_0 : i32, i32
  }
  func.func @transform_3(%arg0: i32) -> (i32, i32) {
    %c0_i32 = arith.constant 0 : i32
    %c0_i32_0 = arith.constant 0 : i32
    %c0_i32_1 = arith.constant 0 : i32
    return %c0_i32, %c0_i32_0 : i32, i32
  }
  func.func @transform_4(%arg0: i32) -> (i32, i32) {
    %c0_i32 = arith.constant 0 : i32
    %c0_i32_0 = arith.constant 0 : i32
    %c0_i32_1 = arith.constant 0 : i32
    return %c0_i32, %c0_i32_0 : i32, i32
  }
  func.func @transform_5(%arg0: i32) -> (i32, i32) {
    %c0_i32 = arith.constant 0 : i32
    %c0_i32_0 = arith.constant 0 : i32
    %c0_i32_1 = arith.constant 0 : i32
    return %c0_i32, %c0_i32_0 : i32, i32
  }
  func.func @transform_6(%arg0: i32) -> (i32, i32) {
    %c0_i32 = arith.constant 0 : i32
    %c0_i32_0 = arith.constant 0 : i32
    %c0_i32_1 = arith.constant 0 : i32
    return %c0_i32, %c0_i32_0 : i32, i32
  }
  func.func @transform_7(%arg0: i32) -> (i32, i32) {
    %c0_i32 = arith.constant 0 : i32
    %c0_i32_0 = arith.constant 0 : i32
    return %arg0, %c0_i32 : i32, i32
  }
}

</mosaic_0001>

<bundles_post_ra>
// kernel: _lambda_.3
= control target key start
LH: loop header
LB: loop body
LE: loop exit
PB: predicated region body
PF: predicated region fallthrough
CT: control target
= control target key end

     0   :  { %s2803_s12 = smov 0   ;;  %s2805_s13 = smov 0   ;;  %s3478_s0 = inlined_call_operand.vmem [shape: bf16[2,2,400,75], index: 0, kind: input, shape index: {}]   ;;  %s3479_s1 = inlined_call_operand.vmem [shape: bf16[75,128], index: 1, kind: input, shape index: {}]   ;;  %s3480_s2 = inlined_call_operand.vmem [shape: f32[1,128], index: 2, kind: input, shape index: {}]   ;;  %s3481_s3 = inlined_call_operand.vmem [shape: bf16[400,128], index: 3, kind: output, shape index: {}]  }
   0x1   :  { %s2807_s14 = smov 0  }
   0x2 LB: > { %s2034_s15 = sadd.s32 4294967295, %s2778_s14   ;;  %s2820_s16 = sadd.s32 1, %s2778_s14   ;;  %s2778_s14 = sphi %s2807_s14, %s3520_s14   ;;  %s2774_s13 = sphi %s2805_s13, %s3519_s13   ;;  %s2770_s12 = sphi %s2803_s12, %s3518_s12  }
   0x3   : > { %s17_s17 = ssub.s32 %s2778_s14, %s2820_s16  ;;  %s20_s18 = sadd.s32 1, %s2774_s13 }
   0x4   : > { %p18_p0 = scmp.eq.s32.totalorder %s17_s17, 0  ;;  %p27_p1 = scmp.ne.s32.totalorder %s2774_s13, %s2770_s12 }
   0x5   : > { %p28_p2 = scmp.eq.s32.totalorder %s2778_s14, 0  ;;  %p2037_p4 = scmp.ge.s32.totalorder %s2778_s14, 2 }
   0x6   : > { %s2829_s19 = scalar_select %p18_p0, %s2774_s13, %s20_s18  }
   0x7   : > { %p29_p3 = por %p28_p2, %p27_p1  ;;  %127 = sbr.rel (%p2037_p4) target bundleno = 45 (0x2d), region = 24 }
   0xe   : > { %130 = sbr.rel (!%p29_p3) target bundleno = 45 (0x2d), region = 28  ;;  %s132_s20 = sand.u32 (%p29_p3), 1, %s2774_s13  }
   0xf   : > { %s2253_s21 = smul.u32 (%p29_p3), 100, %s2778_s14 }
  0x10   : > { %s2670_s22 = smul.u32 (%p29_p3), 400, %s132_s20 }
  0x11   : > { %s2837_s25 = scalar_lea.vmem (%p29_p3), %s3478_s0, %s2253_s21 }
  0x12   : > { %v153_v0 = vld [vmem:[%s2837_s25] sm:$0xff] (%p29_p3)   ;;  %v157_v1 = vld [vmem:[%s2837_s25 + $0x8] sm:$0xff] (%p29_p3)   ;;  %v161_v2 = vld [vmem:[%s2837_s25 + $0x10] sm:$0xff] (%p29_p3)   ;;  %s2842_s26 = scalar_lea.vmem (%p29_p3), [#allocation2], %s2670_s22 }
  0x13   : > { %154 = vst [vmem:[%s2842_s26] sm:$0xff] (%p29_p3), %v153_v0   ;;  %158 = vst [vmem:[%s2842_s26 + $0x8] sm:$0xff] (%p29_p3), %v157_v1   ;;  %v165_v3 = vld [vmem:[%s2837_s25 + $0x18] sm:$0xff] (%p29_p3)   ;;  %v169_v4 = vld [vmem:[%s2837_s25 + $0x20] sm:$0xff] (%p29_p3)  }
  0x14   : > { %162 = vst [vmem:[%s2842_s26 + $0x10] sm:$0xff] (%p29_p3), %v161_v2   ;;  %v173_v5 = vld [vmem:[%s2837_s25 + $0x28] sm:$0xff] (%p29_p3)   ;;  %166 = vst [vmem:[%s2842_s26 + $0x18] sm:$0xff] (%p29_p3), %v165_v3   ;;  %v177_v6 = vld [vmem:[%s2837_s25 + $0x30] sm:$0xff] (%p29_p3)  }
  0x15   : > { %170 = vst [vmem:[%s2842_s26 + $0x20] sm:$0xff] %v169_v4   ;;  %174 = vst [vmem:[%s2842_s26 + $0x28] sm:$0xff] %v173_v5   ;;  %v181_v7 = vld [vmem:[%s2837_s25 + $0x38] sm:$0xff]   ;;  %v185_v8 = vld [vmem:[%s2837_s25 + $0x40] sm:$0xff]  }
  0x16   : > { %178 = vst [vmem:[%s2842_s26 + $0x30] sm:$0xff] %v177_v6   ;;  %182 = vst [vmem:[%s2842_s26 + $0x38] sm:$0xff] %v181_v7   ;;  %v189_v9 = vld [vmem:[%s2837_s25 + $0x48] sm:$0xff]   ;;  %v193_v10 = vld [vmem:[%s2837_s25 + $0x50] sm:$0xff]  }
  0x17   : > { %186 = vst [vmem:[%s2842_s26 + $0x40] sm:$0xff] %v185_v8   ;;  %v197_v11 = vld [vmem:[%s2837_s25 + $0x58] sm:$0xff]   ;;  %190 = vst [vmem:[%s2842_s26 + $0x48] sm:$0xff] %v189_v9   ;;  %v201_v12 = vld [vmem:[%s2837_s25 + $0x60] sm:$0xf] }
  0x18   : > { %194 = vst [vmem:[%s2842_s26 + $0x50] sm:$0xff] %v193_v10   ;;  %198 = vst [vmem:[%s2842_s26 + $0x58] sm:$0xff] %v197_v11   ;;  %v203_v13 = vld [vmem:[%s2837_s25 + $0xc8] sm:$0xff]   ;;  %v207_v14 = vld [vmem:[%s2837_s25 + $0xd0] sm:$0xff]  }
  0x19   : > { %202 = vst [vmem:[%s2842_s26 + $0x60] sm:$0xf] %v201_v12  ;;  %204 = vst [vmem:[%s2842_s26 + $0x64] sm:$0xff] %v203_v13   ;;  %v211_v15 = vld [vmem:[%s2837_s25 + $0xd8] sm:$0xff]   ;;  %v215_v16 = vld [vmem:[%s2837_s25 + $0xe0] sm:$0xff]  }
  0x1a   : > { %208 = vst [vmem:[%s2842_s26 + $0x6c] sm:$0xff] %v207_v14   ;;  %v219_v17 = vld [vmem:[%s2837_s25 + $0xe8] sm:$0xff]   ;;  %212 = vst [vmem:[%s2842_s26 + $0x74] sm:$0xff] %v211_v15   ;;  %v223_v18 = vld [vmem:[%s2837_s25 + $0xf0] sm:$0xff]  }
  0x1b   : > { %216 = vst [vmem:[%s2842_s26 + $0x7c] sm:$0xff] %v215_v16   ;;  %220 = vst [vmem:[%s2842_s26 + $0x84] sm:$0xff] %v219_v17   ;;  %v227_v19 = vld [vmem:[%s2837_s25 + $0xf8] sm:$0xff]   ;;  %v231_v20 = vld [vmem:[%s2837_s25 + $0x100] sm:$0xff]  }
  0x1c   : > { %224 = vst [vmem:[%s2842_s26 + $0x8c] sm:$0xff] %v223_v18   ;;  %228 = vst [vmem:[%s2842_s26 + $0x94] sm:$0xff] %v227_v19   ;;  %v235_v21 = vld [vmem:[%s2837_s25 + $0x108] sm:$0xff]   ;;  %v239_v22 = vld [vmem:[%s2837_s25 + $0x110] sm:$0xff]  }
  0x1d   : > { %232 = vst [vmem:[%s2842_s26 + $0x9c] sm:$0xff] %v231_v20   ;;  %v243_v23 = vld [vmem:[%s2837_s25 + $0x118] sm:$0xff]   ;;  %236 = vst [vmem:[%s2842_s26 + $0xa4] sm:$0xff] %v235_v21   ;;  %v247_v24 = vld [vmem:[%s2837_s25 + $0x120] sm:$0xff]  }
  0x1e   : > { %240 = vst [vmem:[%s2842_s26 + $0xac] sm:$0xff] %v239_v22   ;;  %244 = vst [vmem:[%s2842_s26 + $0xb4] sm:$0xff] %v243_v23   ;;  %v251_v25 = vld [vmem:[%s2837_s25 + $0x128] sm:$0xf]  ;;  %v253_v26 = vld [vmem:[%s2837_s25 + $0x190] sm:$0xff]  }
  0x1f   : > { %248 = vst [vmem:[%s2842_s26 + $0xbc] sm:$0xff] %v247_v24   ;;  %252 = vst [vmem:[%s2842_s26 + $0xc4] sm:$0xf] %v251_v25  ;;  %v257_v27 = vld [vmem:[%s2837_s25 + $0x198] sm:$0xff]   ;;  %v261_v28 = vld [vmem:[%s2837_s25 + $0x1a0] sm:$0xff]  }
  0x20   : > { %254 = vst [vmem:[%s2842_s26 + $0xc8] sm:$0xff] %v253_v26   ;;  %v265_v29 = vld [vmem:[%s2837_s25 + $0x1a8] sm:$0xff]   ;;  %258 = vst [vmem:[%s2842_s26 + $0xd0] sm:$0xff] %v257_v27   ;;  %v269_v30 = vld [vmem:[%s2837_s25 + $0x1b0] sm:$0xff]  }
  0x21   : > { %262 = vst [vmem:[%s2842_s26 + $0xd8] sm:$0xff] %v261_v28   ;;  %266 = vst [vmem:[%s2842_s26 + $0xe0] sm:$0xff] %v265_v29   ;;  %v273_v31 = vld [vmem:[%s2837_s25 + $0x1b8] sm:$0xff]   ;;  %v277_v32 = vld [vmem:[%s2837_s25 + $0x1c0] sm:$0xff]  }
  0x22   : > { %270 = vst [vmem:[%s2842_s26 + $0xe8] sm:$0xff] %v269_v30   ;;  %274 = vst [vmem:[%s2842_s26 + $0xf0] sm:$0xff] %v273_v31   ;;  %v281_v33 = vld [vmem:[%s2837_s25 + $0x1c8] sm:$0xff]   ;;  %v285_v34 = vld [vmem:[%s2837_s25 + $0x1d0] sm:$0xff]  }
  0x23   : > { %278 = vst [vmem:[%s2842_s26 + $0xf8] sm:$0xff] %v277_v32   ;;  %v289_v35 = vld [vmem:[%s2837_s25 + $0x1d8] sm:$0xff]   ;;  %282 = vst [vmem:[%s2842_s26 + $0x100] sm:$0xff] %v281_v33   ;;  %v293_v36 = vld [vmem:[%s2837_s25 + $0x1e0] sm:$0xff]  }
  0x24   : > { %286 = vst [vmem:[%s2842_s26 + $0x108] sm:$0xff] %v285_v34   ;;  %290 = vst [vmem:[%s2842_s26 + $0x110] sm:$0xff] %v289_v35   ;;  %v297_v37 = vld [vmem:[%s2837_s25 + $0x1e8] sm:$0xff]   ;;  %v301_v38 = vld [vmem:[%s2837_s25 + $0x1f0] sm:$0xf] }
  0x25   : > { %294 = vst [vmem:[%s2842_s26 + $0x118] sm:$0xff] %v293_v36   ;;  %298 = vst [vmem:[%s2842_s26 + $0x120] sm:$0xff] %v297_v37   ;;  %v303_v39 = vld [vmem:[%s2837_s25 + $0x258] sm:$0xff]   ;;  %v307_v40 = vld [vmem:[%s2837_s25 + $0x260] sm:$0xff]  }
  0x26   : > { %302 = vst [vmem:[%s2842_s26 + $0x128] sm:$0xf] %v301_v38  ;;  %v311_v41 = vld [vmem:[%s2837_s25 + $0x268] sm:$0xff]   ;;  %304 = vst [vmem:[%s2842_s26 + $0x12c] sm:$0xff] %v303_v39   ;;  %v315_v42 = vld [vmem:[%s2837_s25 + $0x270] sm:$0xff]  }
  0x27   : > { %308 = vst [vmem:[%s2842_s26 + $0x134] sm:$0xff] %v307_v40   ;;  %312 = vst [vmem:[%s2842_s26 + $0x13c] sm:$0xff] %v311_v41   ;;  %v319_v43 = vld [vmem:[%s2837_s25 + $0x278] sm:$0xff]   ;;  %v323_v44 = vld [vmem:[%s2837_s25 + $0x280] sm:$0xff]  }
  0x28   : > { %316 = vst [vmem:[%s2842_s26 + $0x144] sm:$0xff] %v315_v42   ;;  %320 = vst [vmem:[%s2842_s26 + $0x14c] sm:$0xff] %v319_v43   ;;  %v327_v45 = vld [vmem:[%s2837_s25 + $0x288] sm:$0xff]   ;;  %v331_v46 = vld [vmem:[%s2837_s25 + $0x290] sm:$0xff]  }
  0x29   : > { %324 = vst [vmem:[%s2842_s26 + $0x154] sm:$0xff] %v323_v44   ;;  %v335_v47 = vld [vmem:[%s2837_s25 + $0x298] sm:$0xff]   ;;  %328 = vst [vmem:[%s2842_s26 + $0x15c] sm:$0xff] %v327_v45   ;;  %v339_v48 = vld [vmem:[%s2837_s25 + $0x2a0] sm:$0xff]  }
  0x2a   : > { %332 = vst [vmem:[%s2842_s26 + $0x164] sm:$0xff] %v331_v46   ;;  %336 = vst [vmem:[%s2842_s26 + $0x16c] sm:$0xff] %v335_v47   ;;  %v343_v49 = vld [vmem:[%s2837_s25 + $0x2a8] sm:$0xff]   ;;  %v347_v50 = vld [vmem:[%s2837_s25 + $0x2b0] sm:$0xff]  }
  0x2b   : > { %340 = vst [vmem:[%s2842_s26 + $0x174] sm:$0xff] %v339_v48   ;;  %344 = vst [vmem:[%s2842_s26 + $0x17c] sm:$0xff] %v343_v49   ;;  %v351_v51 = vld [vmem:[%s2837_s25 + $0x2b8] sm:$0xf] }
  0x2c   : > { %348 = vst [vmem:[%s2842_s26 + $0x184] sm:$0xff] %v347_v50   ;;  %352 = vst [vmem:[%s2842_s26 + $0x18c] sm:$0xf] %v351_v51 }
  0x2d PF: > { %p2039_p5 = scmp.ge.s32.totalorder %s2778_s14, 1  ;;  %p574_p6 = scmp.lt.s32.totalorder %s2778_s14, 3 }
  0x2f   : > { %p575_p7 = pnand %p2039_p5, %p574_p6 }
  0x31   : > { %578 = sbr.rel (%p575_p7) target bundleno = 500 (0x1f4), region = 69 }
  0x38   : > { %v2699_v52 = vld [vmem:[%s3479_s1] sm:$0xff]   ;;  %v2780_v53 = vmov 0.0   ;;  %v2700_v54 = vld [vmem:[%s3479_s1 + $0x8] sm:$0xff]   ;;  %vm779_vm0 = vcmask 1044480   ;;  %s581_s4 = sand.u32 1, %s2770_s12   ;;  %v2701_v55 = vld [vmem:[%s3479_s1 + $0x10] sm:$0xff]  }
  0x39   : > { %2422 = vmatprep.subr.bf16.mxu0 %v2780_v53  ;;  %2484 = vmatprep.subr.bf16.mxu1 %v2780_v53  ;;  %s2671_s7 = smul.u32 400, %s581_s4  ;;  %vm780_vm1 = vcmask 1045504   ;;  %v2781_v56 = vmov 65535   ;;  %vm2782_vm2 = vmmov 0   ;;  %v2702_v58 = vld [vmem:[%s3479_s1 + $0x18] sm:$0xff]   ;;  %vm739_vm3 = vcmask 613376  }
  0x3a   : > { %2423 = vmatpush3.bf16.msra.mxu0 %v2699_v52  ;;  %2485 = vmatpush3.bf16.msra.mxu1 %v2699_v52  ;;  %v781_v57 = vsel %vm779_vm0, 4294967295, %v2781_v56  ;;  %v2703_v59 = vld [vmem:[%s3479_s1 + $0x20] sm:$0x3f]   ;;  %s605_s17 = smul.u32 25, %s2034_s15 }
  0x3b   : > { %2424 = vmatprep.subr.bf16.mxu0 %v2780_v53  ;;  %2486 = vmatprep.subr.bf16.mxu1 %v2780_v53  ;;  %s2970_s10 = scalar_lea.vmem [#allocation2], %s2671_s7  ;;  %v782_v60 = vsel %vm780_vm1, %v781_v57, 0 }
  0x3c   : > { %2432 = vmatprep.mubr.msk.bf16.mxu0 %vm2782_vm2, %v2780_v53  ;;  %2494 = vmatprep.mubr.msk.bf16.mxu1 %vm2782_vm2, %v2780_v53  ;;  %v784_v61 = vand.u32 %v2703_v59, %v782_v60  ;;  %v2704_v62 = vld [vmem:[%s2970_s10] sm:$0xff]   ;;  %v2706_v0 = vld [vmem:[%s2970_s10 + $0x8] sm:$0xff]   ;;  %v2708_v2 = vld [vmem:[%s2970_s10 + $0x10] sm:$0xff]   ;;  %p606_p8 = scmp.lt.s32.totalorder %s605_s17, 49 }
  0x3d   : > { %v2705_v63 = vld [vmem:[%s2970_s10 + $0x64] sm:$0xff]   ;;  %v2707_v1 = vld [vmem:[%s2970_s10 + $0x6c] sm:$0xff]   ;;  %v2709_v3 = vld [vmem:[%s2970_s10 + $0x74] sm:$0xff]  }
  0x3e   : > { %2425 = vmatpush3.bf16.msra.mxu0 %v2700_v54  ;;  %2487 = vmatpush3.bf16.msra.mxu1 %v2700_v54  ;;  %v2710_v4 = vld [vmem:[%s2970_s10 + $0x18] sm:$0xff]   ;;  %v2712_v6 = vld [vmem:[%s2970_s10 + $0x20] sm:$0xff]   ;;  %v2714_v8 = vld [vmem:[%s2970_s10 + $0x28] sm:$0xff]   ;;  %s3522_s17 = smov (!%p606_p8, %s605_s17), 49 }
  0x3f   : > { %2426 = vmatprep.subr.bf16.mxu0 %v2780_v53  ;;  %2488 = vmatprep.subr.bf16.mxu1 %v2780_v53  ;;  %v2711_v5 = vld [vmem:[%s2970_s10 + $0x7c] sm:$0xff]   ;;  %v2713_v7 = vld [vmem:[%s2970_s10 + $0x84] sm:$0xff]   ;;  %v2715_v9 = vld [vmem:[%s2970_s10 + $0x8c] sm:$0xff]   ;;  %s2040_s14 = sshll.u32 %s3522_s17, 2 }
  0x40   : > { %v2716_v10 = vld [vmem:[%s2970_s10 + $0x30] sm:$0xff]   ;;  %v2718_v12 = vld [vmem:[%s2970_s10 + $0x38] sm:$0xff]   ;;  %v2720_v14 = vld [vmem:[%s2970_s10 + $0x40] sm:$0xff]   ;;  %s3361_s22 = scalar_lea.vmem %s3481_s3, %s2040_s14 }
  0x41   : > { %v2717_v11 = vld [vmem:[%s2970_s10 + $0x94] sm:$0xff]   ;;  %v2719_v13 = vld [vmem:[%s2970_s10 + $0x9c] sm:$0xff]   ;;  %v2721_v15 = vld [vmem:[%s2970_s10 + $0xa4] sm:$0xff]  }
  0x42   : > { %2427 = vmatpush3.bf16.msra.mxu0 %v2701_v55  ;;  %2489 = vmatpush3.bf16.msra.mxu1 %v2701_v55  ;;  %v2722_v16 = vld [vmem:[%s2970_s10 + $0x48] sm:$0xff]   ;;  %v2724_v18 = vld [vmem:[%s2970_s10 + $0x50] sm:$0xff]   ;;  %v2726_v20 = vld [vmem:[%s2970_s10 + $0x58] sm:$0xff]  }
  0x43   : > { %2428 = vmatprep.subr.bf16.mxu0 %v2780_v53  ;;  %2490 = vmatprep.subr.bf16.mxu1 %v2780_v53  ;;  %v2723_v17 = vld [vmem:[%s2970_s10 + $0xac] sm:$0xff]   ;;  %v2725_v19 = vld [vmem:[%s2970_s10 + $0xb4] sm:$0xff]   ;;  %v2727_v21 = vld [vmem:[%s2970_s10 + $0xbc] sm:$0xff]  }
  0x44   : > { %v2728_v22 = vld [vmem:[%s2970_s10 + $0x60] ss:$0 sps:$4 sm:$0xff]   ;;  %v2729_v23 = vld [vmem:[%s2970_s10 + $0xc4] ss:$0 sps:$4 sm:$0xff]   ;;  %v2730_v24 = vld [vmem:[%s2970_s10 + $0xc8] sm:$0xff]  }
  0x45   : > { %v2731_v25 = vld [vmem:[%s2970_s10 + $0x12c] sm:$0xff]   ;;  %v2733_v27 = vld [vmem:[%s2970_s10 + $0x134] sm:$0xff]   ;;  %v2735_v29 = vld [vmem:[%s2970_s10 + $0x13c] sm:$0xff]  }
  0x46   : > { %2429 = vmatpush3.bf16.msra.mxu0 %v2702_v58  ;;  %2491 = vmatpush3.bf16.msra.mxu1 %v2702_v58  ;;  %v2732_v26 = vld [vmem:[%s2970_s10 + $0xd0] sm:$0xff]   ;;  %v2734_v28 = vld [vmem:[%s2970_s10 + $0xd8] sm:$0xff]   ;;  %v2736_v30 = vld [vmem:[%s2970_s10 + $0xe0] sm:$0xff]  }
  0x47   : > { %2430 = vmatprep.subr.bf16.mxu0 %v2780_v53  ;;  %2492 = vmatprep.subr.bf16.mxu1 %v2780_v53  ;;  %v2737_v31 = vld [vmem:[%s2970_s10 + $0x144] sm:$0xff]   ;;  %v2739_v33 = vld [vmem:[%s2970_s10 + $0x14c] sm:$0xff]   ;;  %v2741_v35 = vld [vmem:[%s2970_s10 + $0x154] sm:$0xff]  }
  0x48   : > { %v2738_v32 = vld [vmem:[%s2970_s10 + $0xe8] sm:$0xff]   ;;  %v2740_v34 = vld [vmem:[%s2970_s10 + $0xf0] sm:$0xff]   ;;  %v2742_v36 = vld [vmem:[%s2970_s10 + $0xf8] sm:$0xff]  }
  0x49   : > { %v2743_v37 = vld [vmem:[%s2970_s10 + $0x15c] sm:$0xff]   ;;  %v2745_v39 = vld [vmem:[%s2970_s10 + $0x164] sm:$0xff]   ;;  %v2747_v41 = vld [vmem:[%s2970_s10 + $0x16c] sm:$0xff]  }
  0x4a   : > { %2431 = vmatpush3.bf16.msra.mxu0 %v784_v61  ;;  %2493 = vmatpush3.bf16.msra.mxu1 %v784_v61  ;;  %v2744_v38 = vld [vmem:[%s2970_s10 + $0x100] sm:$0xff]   ;;  %v2746_v40 = vld [vmem:[%s2970_s10 + $0x108] sm:$0xff]   ;;  %v2748_v42 = vld [vmem:[%s2970_s10 + $0x110] sm:$0xff]  }
  0x4b   : > { %2546 = vmatprep.subr.bf16.mxu0 %v2780_v53  ;;  %2608 = vmatprep.subr.bf16.mxu1 %v2780_v53  ;;  %v2749_v43 = vld [vmem:[%s2970_s10 + $0x174] sm:$0xff]   ;;  %v2751_v45 = vld [vmem:[%s2970_s10 + $0x17c] sm:$0xff]   ;;  %v2753_v47 = vld [vmem:[%s2970_s10 + $0x184] sm:$0xff]  }
  0x4c   : > { %v2750_v44 = vld [vmem:[%s2970_s10 + $0x118] sm:$0xff]   ;;  %v2752_v46 = vld [vmem:[%s2970_s10 + $0x120] sm:$0xff]   ;;  %v2754_v48 = vld [vmem:[%s2970_s10 + $0x128] ss:$0 sps:$4 sm:$0xff]  }
  0x4d   : > { %2433 = vmatmul.mubr.msk.bf16.vlgmr.msra.gmra.mrb[0].mxu0 %vm739_vm3, %v2704_v62  ;;  %2495 = vmatmul.mubr.msk.bf16.vlgmr.msra.gmra.mrb[0].mxu1 %vm739_vm3, %v2705_v63  ;;  %v2755_v49 = vld [vmem:[%s2970_s10 + $0x18c] ss:$0 sps:$4 sm:$0xff]  }
  0x4e   : > { %2547 = vmatpush3.bf16.msra.mxu0 %v2699_v52  ;;  %2609 = vmatpush3.bf16.msra.mxu1 %v2699_v52 }
  0x4f   : > { %2436 = vmatprep.mubr.msk.bf16.mxu0 %vm2782_vm2, %v2780_v53  ;;  %2498 = vmatprep.mubr.msk.bf16.mxu1 %vm2782_vm2, %v2780_v53 }
  0x50   : > { %2548 = vmatprep.subr.bf16.mxu0 %v2780_v53  ;;  %2610 = vmatprep.subr.bf16.mxu1 %v2780_v53 }
  0x52   : > { %2549 = vmatpush3.bf16.msra.mxu0 %v2700_v54  ;;  %2611 = vmatpush3.bf16.msra.mxu1 %v2700_v54 }
  0x53   : > { %2550 = vmatprep.subr.bf16.mxu0 %v2780_v53  ;;  %2612 = vmatprep.subr.bf16.mxu1 %v2780_v53 }
  0x55   : > { %2437 = vmatmul.mubr.msk.bf16.gmra.mrb[4].mxu0 %vm739_vm3, %v2706_v0  ;;  %2499 = vmatmul.mubr.msk.bf16.gmra.mrb[4].mxu1 %vm739_vm3, %v2707_v1 }
  0x56   : > { %2440 = vmatprep.mubr.msk.bf16.mxu0 %vm2782_vm2, %v2780_v53  ;;  %2502 = vmatprep.mubr.msk.bf16.mxu1 %vm2782_vm2, %v2780_v53 }
  0x57   : > { %2551 = vmatpush3.bf16.msra.mxu0 %v2701_v55  ;;  %2613 = vmatpush3.bf16.msra.mxu1 %v2701_v55 }
  0x58   : > { %2552 = vmatprep.subr.bf16.mxu0 %v2780_v53  ;;  %2614 = vmatprep.subr.bf16.mxu1 %v2780_v53 }
  0x5b   : > { %2553 = vmatpush3.bf16.msra.mxu0 %v2702_v58  ;;  %2615 = vmatpush3.bf16.msra.mxu1 %v2702_v58 }
  0x5c   : > { %2554 = vmatprep.subr.bf16.mxu0 %v2780_v53  ;;  %2616 = vmatprep.subr.bf16.mxu1 %v2780_v53 }
  0x5d   : > { %2441 = vmatmul.mubr.msk.bf16.gmra.mrb[8].mxu0 %vm739_vm3, %v2708_v2  ;;  %2503 = vmatmul.mubr.msk.bf16.gmra.mrb[8].mxu1 %vm739_vm3, %v2709_v3 }
  0x5e   : > { %2444 = vmatprep.mubr.msk.bf16.mxu0 %vm2782_vm2, %v2780_v53  ;;  %2506 = vmatprep.mubr.msk.bf16.mxu1 %vm2782_vm2, %v2780_v53 }
  0x5f   : > { %2555 = vmatpush3.bf16.msra.mxu0 %v784_v61  ;;  %2617 = vmatpush3.bf16.msra.mxu1 %v784_v61 }
  0x65   : > { %2445 = vmatmul.mubr.msk.bf16.gmra.mrb[12].mxu0 %vm739_vm3, %v2710_v4  ;;  %2507 = vmatmul.mubr.msk.bf16.gmra.mrb[12].mxu1 %vm739_vm3, %v2711_v5 }
  0x66   : > { %2448 = vmatprep.mubr.msk.bf16.mxu0 %vm2782_vm2, %v2780_v53  ;;  %2510 = vmatprep.mubr.msk.bf16.mxu1 %vm2782_vm2, %v2780_v53 }
  0x6d   : > { %2449 = vmatmul.mubr.msk.bf16.gmra.mrb[16].mxu0 %vm739_vm3, %v2712_v6  ;;  %2511 = vmatmul.mubr.msk.bf16.gmra.mrb[16].mxu1 %vm739_vm3, %v2713_v7 }
  0x6e   : > { %2452 = vmatprep.mubr.msk.bf16.mxu0 %vm2782_vm2, %v2780_v53  ;;  %2514 = vmatprep.mubr.msk.bf16.mxu1 %vm2782_vm2, %v2780_v53 }
  0x75   : > { %2453 = vmatmul.mubr.msk.bf16.gmra.mrb[20].mxu0 %vm739_vm3, %v2714_v8  ;;  %2515 = vmatmul.mubr.msk.bf16.gmra.mrb[20].mxu1 %vm739_vm3, %v2715_v9 }
  0x76   : > { %2456 = vmatprep.mubr.msk.bf16.mxu0 %vm2782_vm2, %v2780_v53  ;;  %2518 = vmatprep.mubr.msk.bf16.mxu1 %vm2782_vm2, %v2780_v53 }
  0x7d   : > { %2457 = vmatmul.mubr.msk.bf16.gmra.mrb[24].mxu0 %vm739_vm3, %v2716_v10  ;;  %2519 = vmatmul.mubr.msk.bf16.gmra.mrb[24].mxu1 %vm739_vm3, %v2717_v11 }
  0x7e   : > { %2460 = vmatprep.mubr.msk.bf16.mxu0 %vm2782_vm2, %v2780_v53  ;;  %2522 = vmatprep.mubr.msk.bf16.mxu1 %vm2782_vm2, %v2780_v53 }
  0x85   : > { %2461 = vmatmul.mubr.msk.bf16.gmra.mrb[28].mxu0 %vm739_vm3, %v2718_v12  ;;  %2523 = vmatmul.mubr.msk.bf16.gmra.mrb[28].mxu1 %vm739_vm3, %v2719_v13 }
  0x86   : > { %2464 = vmatprep.mubr.msk.bf16.mxu0 %vm2782_vm2, %v2780_v53  ;;  %2526 = vmatprep.mubr.msk.bf16.mxu1 %vm2782_vm2, %v2780_v53 }
  0x8d   : > { %2465 = vmatmul.mubr.msk.bf16.gmra.mrb[32].mxu0 %vm739_vm3, %v2720_v14  ;;  %2527 = vmatmul.mubr.msk.bf16.gmra.mrb[32].mxu1 %vm739_vm3, %v2721_v15 }
  0x8e   : > { %2468 = vmatprep.mubr.msk.bf16.mxu0 %vm2782_vm2, %v2780_v53  ;;  %2530 = vmatprep.mubr.msk.bf16.mxu1 %vm2782_vm2, %v2780_v53 }
  0x95   : > { %2469 = vmatmul.mubr.msk.bf16.gmra.mrb[36].mxu0 %vm739_vm3, %v2722_v16  ;;  %2531 = vmatmul.mubr.msk.bf16.gmra.mrb[36].mxu1 %vm739_vm3, %v2723_v17 }
  0x96   : > { %2472 = vmatprep.mubr.msk.bf16.mxu0 %vm2782_vm2, %v2780_v53  ;;  %2534 = vmatprep.mubr.msk.bf16.mxu1 %vm2782_vm2, %v2780_v53 }
  0x9d   : > { %2473 = vmatmul.mubr.msk.bf16.gmra.mrb[40].mxu0 %vm739_vm3, %v2724_v18  ;;  %2535 = vmatmul.mubr.msk.bf16.gmra.mrb[40].mxu1 %vm739_vm3, %v2725_v19 }
  0x9e   : > { %2476 = vmatprep.mubr.msk.bf16.mxu0 %vm2782_vm2, %v2780_v53  ;;  %2538 = vmatprep.mubr.msk.bf16.mxu1 %vm2782_vm2, %v2780_v53 }
  0xa5   : > { %2477 = vmatmul.mubr.msk.bf16.gmra.mrb[44].mxu0 %vm739_vm3, %v2726_v20  ;;  %2539 = vmatmul.mubr.msk.bf16.gmra.mrb[44].mxu1 %vm739_vm3, %v2727_v21 }
  0xa6   : > { %2480 = vmatprep.mubr.msk.bf16.mxu0 %vm2782_vm2, %v2780_v53  ;;  %2542 = vmatprep.mubr.msk.bf16.mxu1 %vm2782_vm2, %v2780_v53 }
  0xad   : > { %2481 = vmatmul.mubr.msk.bf16.gmra.mrb[48].mxu0 %vm739_vm3, %v2728_v22  ;;  %2543 = vmatmul.mubr.msk.bf16.gmra.mrb[48].mxu1 %vm739_vm3, %v2729_v23 }
  0xae   : > { %2556 = vmatprep.mubr.msk.bf16.mxu0 %vm2782_vm2, %v2780_v53  ;;  %2618 = vmatprep.mubr.msk.bf16.mxu1 %vm2782_vm2, %v2780_v53 }
  0xb5   : > { %2557 = vmatmul.mubr.msk.bf16.vlgmr.msra.gmra.mrb[52].mxu0 %vm739_vm3, %v2730_v24  ;;  %2619 = vmatmul.mubr.msk.bf16.vlgmr.msra.gmra.mrb[52].mxu1 %vm739_vm3, %v2731_v25 }
  0xb6   : > { %2560 = vmatprep.mubr.msk.bf16.mxu0 %vm2782_vm2, %v2780_v53  ;;  %2622 = vmatprep.mubr.msk.bf16.mxu1 %vm2782_vm2, %v2780_v53 }
  0xbd   : > { %2561 = vmatmul.mubr.msk.bf16.gmra.mrb[56].mxu0 %vm739_vm3, %v2732_v26  ;;  %2623 = vmatmul.mubr.msk.bf16.gmra.mrb[56].mxu1 %vm739_vm3, %v2733_v27 }
  0xbe   : > { %2564 = vmatprep.mubr.msk.bf16.mxu0 %vm2782_vm2, %v2780_v53  ;;  %2626 = vmatprep.mubr.msk.bf16.mxu1 %vm2782_vm2, %v2780_v53 }
  0xc5   : > { %2565 = vmatmul.mubr.msk.bf16.gmra.mrb[60].mxu0 %vm739_vm3, %v2734_v28  ;;  %2627 = vmatmul.mubr.msk.bf16.gmra.mrb[60].mxu1 %vm739_vm3, %v2735_v29 }
  0xc6   : > { %2568 = vmatprep.mubr.msk.bf16.mxu0 %vm2782_vm2, %v2780_v53  ;;  %2630 = vmatprep.mubr.msk.bf16.mxu1 %vm2782_vm2, %v2780_v53 }
  0xcd   : > { %2569 = vmatmul.mubr.msk.bf16.gmra.mrb[64].mxu0 %vm739_vm3, %v2736_v30  ;;  %2631 = vmatmul.mubr.msk.bf16.gmra.mrb[64].mxu1 %vm739_vm3, %v2737_v31 }
  0xce   : > { %2572 = vmatprep.mubr.msk.bf16.mxu0 %vm2782_vm2, %v2780_v53  ;;  %2634 = vmatprep.mubr.msk.bf16.mxu1 %vm2782_vm2, %v2780_v53 }
  0xd5   : > { %2573 = vmatmul.mubr.msk.bf16.gmra.mrb[68].mxu0 %vm739_vm3, %v2738_v32  ;;  %2635 = vmatmul.mubr.msk.bf16.gmra.mrb[68].mxu1 %vm739_vm3, %v2739_v33 }
  0xd6   : > { %2576 = vmatprep.mubr.msk.bf16.mxu0 %vm2782_vm2, %v2780_v53  ;;  %2638 = vmatprep.mubr.msk.bf16.mxu1 %vm2782_vm2, %v2780_v53 }
  0xdd   : > { %2577 = vmatmul.mubr.msk.bf16.gmra.mrb[72].mxu0 %vm739_vm3, %v2740_v34  ;;  %2639 = vmatmul.mubr.msk.bf16.gmra.mrb[72].mxu1 %vm739_vm3, %v2741_v35 }
  0xde   : > { %2580 = vmatprep.mubr.msk.bf16.mxu0 %vm2782_vm2, %v2780_v53  ;;  %2642 = vmatprep.mubr.msk.bf16.mxu1 %vm2782_vm2, %v2780_v53 }
  0xe5   : > { %2581 = vmatmul.mubr.msk.bf16.gmra.mrb[76].mxu0 %vm739_vm3, %v2742_v36  ;;  %2643 = vmatmul.mubr.msk.bf16.gmra.mrb[76].mxu1 %vm739_vm3, %v2743_v37 }
  0xe6   : > { %2584 = vmatprep.mubr.msk.bf16.mxu0 %vm2782_vm2, %v2780_v53  ;;  %2646 = vmatprep.mubr.msk.bf16.mxu1 %vm2782_vm2, %v2780_v53 }
  0xed   : > { %2585 = vmatmul.mubr.msk.bf16.gmra.mrb[80].mxu0 %vm739_vm3, %v2744_v38  ;;  %2647 = vmatmul.mubr.msk.bf16.gmra.mrb[80].mxu1 %vm739_vm3, %v2745_v39 }
  0xee   : > { %2588 = vmatprep.mubr.msk.bf16.mxu0 %vm2782_vm2, %v2780_v53  ;;  %2650 = vmatprep.mubr.msk.bf16.mxu1 %vm2782_vm2, %v2780_v53 }
  0xf5   : > { %2589 = vmatmul.mubr.msk.bf16.gmra.mrb[84].mxu0 %vm739_vm3, %v2746_v40  ;;  %2651 = vmatmul.mubr.msk.bf16.gmra.mrb[84].mxu1 %vm739_vm3, %v2747_v41 }
  0xf6   : > { %2592 = vmatprep.mubr.msk.bf16.mxu0 %vm2782_vm2, %v2780_v53  ;;  %2654 = vmatprep.mubr.msk.bf16.mxu1 %vm2782_vm2, %v2780_v53 }
  0xfd   : > { %2593 = vmatmul.mubr.msk.bf16.gmra.mrb[88].mxu0 %vm739_vm3, %v2748_v42  ;;  %2655 = vmatmul.mubr.msk.bf16.gmra.mrb[88].mxu1 %vm739_vm3, %v2749_v43 }
  0xfe   : > { %2596 = vmatprep.mubr.msk.bf16.mxu0 %vm2782_vm2, %v2780_v53  ;;  %2658 = vmatprep.mubr.msk.bf16.mxu1 %vm2782_vm2, %v2780_v53 }
 0x105   : > { %2597 = vmatmul.mubr.msk.bf16.gmra.mrb[92].mxu0 %vm739_vm3, %v2750_v44  ;;  %2659 = vmatmul.mubr.msk.bf16.gmra.mrb[92].mxu1 %vm739_vm3, %v2751_v45 }
 0x106   : > { %2600 = vmatprep.mubr.msk.bf16.mxu0 %vm2782_vm2, %v2780_v53  ;;  %2662 = vmatprep.mubr.msk.bf16.mxu1 %vm2782_vm2, %v2780_v53 }
 0x10d   : > { %2601 = vmatmul.mubr.msk.bf16.gmra.mrb[96].mxu0 %vm739_vm3, %v2752_v46  ;;  %2663 = vmatmul.mubr.msk.bf16.gmra.mrb[96].mxu1 %vm739_vm3, %v2753_v47 }
 0x10e   : > { %2604 = vmatprep.mubr.msk.bf16.mxu0 %vm2782_vm2, %v2780_v53  ;;  %2666 = vmatprep.mubr.msk.bf16.mxu1 %vm2782_vm2, %v2780_v53  ;;  %v3348_v53 = vld [vmem:[%s3480_s2] ss:$0 sm:$0xff] }
 0x115   : > { %2605 = vmatmul.mubr.msk.bf16.gmra.mrb[100].mxu0 %vm739_vm3, %v2754_v48  ;;  %2667 = vmatmul.mubr.msk.bf16.gmra.mrb[100].mxu1 %vm739_vm3, %v2755_v49 }
 0x120   : > { %v3193_v50 = vpop.f32.mrb[0].mxu0  ;;  %v3195_v51 = vpop.f32.mrb[0].mxu1 }
 0x121   : > { %v1186_v52 = vmax.f32 %v3193_v50, %v3195_v51  ;;  %v2434_v54 = vpop.f32.mrb[1].mxu0  ;;  %v2496_v55 = vpop.f32.mrb[1].mxu1 }
 0x122   : > { %v3199_v56 = vpop.f32.mrb[2].mxu0  ;;  %v3201_v57 = vpop.f32.mrb[2].mxu1 }
 0x123   : > { %v2435_v58 = vpop.f32.mrb[3].mxu0  ;;  %v2497_v59 = vpop.f32.mrb[3].mxu1 }
 0x128   : > { %v3205_v60 = vpop.f32.mrb[4].mxu0  ;;  %v3207_v61 = vpop.f32.mrb[4].mxu1 }
 0x129   : > { %v2438_v63 = vpop.f32.mrb[5].mxu0  ;;  %v2500_v0 = vpop.f32.mrb[5].mxu1 }
 0x12a   : > { %v3211_v1 = vpop.f32.mrb[6].mxu0  ;;  %v3213_v2 = vpop.f32.mrb[6].mxu1 }
 0x12b   : > { %v2439_v4 = vpop.f32.mrb[7].mxu0  ;;  %v2501_v5 = vpop.f32.mrb[7].mxu1 }
 0x130   : > { %v3217_v6 = vpop.f32.mrb[8].mxu0  ;;  %v3219_v7 = vpop.f32.mrb[8].mxu1 }
 0x131   : > { %v2442_v9 = vpop.f32.mrb[9].mxu0  ;;  %v2504_v10 = vpop.f32.mrb[9].mxu1 }
 0x132   : > { %v3223_v11 = vpop.f32.mrb[10].mxu0  ;;  %v3225_v12 = vpop.f32.mrb[10].mxu1 }
 0x133   : > { %v2443_v14 = vpop.f32.mrb[11].mxu0  ;;  %v2505_v15 = vpop.f32.mrb[11].mxu1 }
 0x138   : > { %v3229_v16 = vpop.f32.mrb[12].mxu0  ;;  %v3231_v17 = vpop.f32.mrb[12].mxu1 }
 0x139   : > { %v2446_v19 = vpop.f32.mrb[13].mxu0  ;;  %v2508_v20 = vpop.f32.mrb[13].mxu1 }
 0x13a   : > { %v3235_v21 = vpop.f32.mrb[14].mxu0  ;;  %v3237_v22 = vpop.f32.mrb[14].mxu1 }
 0x13b   : > { %v2447_v24 = vpop.f32.mrb[15].mxu0  ;;  %v2509_v25 = vpop.f32.mrb[15].mxu1 }
 0x140   : > { %v3241_v26 = vpop.f32.mrb[16].mxu0  ;;  %v3243_v27 = vpop.f32.mrb[16].mxu1 }
 0x141   : > { %v2450_v29 = vpop.f32.mrb[17].mxu0  ;;  %v2512_v30 = vpop.f32.mrb[17].mxu1 }
 0x142   : > { %v3247_v31 = vpop.f32.mrb[18].mxu0  ;;  %v3249_v32 = vpop.f32.mrb[18].mxu1 }
 0x143   : > { %v2451_v34 = vpop.f32.mrb[19].mxu0  ;;  %v2513_v35 = vpop.f32.mrb[19].mxu1 }
 0x148   : > { %v3253_v36 = vpop.f32.mrb[20].mxu0  ;;  %v3255_v37 = vpop.f32.mrb[20].mxu1 }
 0x149   : > { %v2454_v39 = vpop.f32.mrb[21].mxu0  ;;  %v2516_v40 = vpop.f32.mrb[21].mxu1 }
 0x14a   : > { %v3259_v41 = vpop.f32.mrb[22].mxu0  ;;  %v3261_v42 = vpop.f32.mrb[22].mxu1 }
 0x14b   : > { %v2455_v44 = vpop.f32.mrb[23].mxu0  ;;  %v2517_v45 = vpop.f32.mrb[23].mxu1 }
 0x150   : > { %v3265_v46 = vpop.f32.mrb[24].mxu0  ;;  %v3267_v47 = vpop.f32.mrb[24].mxu1 }
 0x151   : > { %v2458_v49 = vpop.f32.mrb[25].mxu0  ;;  %v2520_v54 = vpop.f32.mrb[25].mxu1 }
 0x152   : > { %v3271_v55 = vpop.f32.mrb[26].mxu0  ;;  %v3273_v58 = vpop.f32.mrb[26].mxu1 }
 0x153   : > { %v2459_v63 = vpop.f32.mrb[27].mxu0  ;;  %v2521_v0 = vpop.f32.mrb[27].mxu1 }
 0x158   : > { %v3277_v4 = vpop.f32.mrb[28].mxu0  ;;  %v3279_v5 = vpop.f32.mrb[28].mxu1 }
 0x159   : > { %v2462_v10 = vpop.f32.mrb[29].mxu0  ;;  %v2524_v14 = vpop.f32.mrb[29].mxu1 }
 0x15a   : > { %v3283_v15 = vpop.f32.mrb[30].mxu0  ;;  %v3285_v19 = vpop.f32.mrb[30].mxu1 }
 0x15b   : > { %v2463_v24 = vpop.f32.mrb[31].mxu0  ;;  %v2525_v25 = vpop.f32.mrb[31].mxu1 }
 0x160   : > { %v3289_v29 = vpop.f32.mrb[32].mxu0  ;;  %v3291_v30 = vpop.f32.mrb[32].mxu1 }
 0x161   : > { %v2466_v35 = vpop.f32.mrb[33].mxu0  ;;  %v2528_v39 = vpop.f32.mrb[33].mxu1 }
 0x162   : > { %v3295_v40 = vpop.f32.mrb[34].mxu0  ;;  %v3297_v44 = vpop.f32.mrb[34].mxu1 }
 0x163   : > { %v2467_v49 = vpop.f32.mrb[35].mxu0  ;;  %v2529_v54 = vpop.f32.mrb[35].mxu1 }
 0x168   : > { %v3301_v63 = vpop.f32.mrb[36].mxu0  ;;  %v3303_v0 = vpop.f32.mrb[36].mxu1 }
 0x169   : > { %v2470_v14 = vpop.f32.mrb[37].mxu0  ;;  %v2532_v24 = vpop.f32.mrb[37].mxu1 }
 0x16a   : > { %v3307_v25 = vpop.f32.mrb[38].mxu0  ;;  %v3309_v35 = vpop.f32.mrb[38].mxu1 }
 0x16b   : > { %v2471_v34 = vpop.f32.mrb[39].mxu0  ;;  %v2533_v45 = vpop.f32.mrb[39].mxu1 }
 0x170   : > { %v3313_v49 = vpop.f32.mrb[40].mxu0  ;;  %v3315_v54 = vpop.f32.mrb[40].mxu1 }
 0x171   : > { %v2474_v9 = vpop.f32.mrb[41].mxu0  ;;  %v2536_v10 = vpop.f32.mrb[41].mxu1 }
 0x172   : > { %v3319_v14 = vpop.f32.mrb[42].mxu0  ;;  %v3321_v24 = vpop.f32.mrb[42].mxu1 }
 0x173   : > { %v2475_v48 = vpop.f32.mrb[43].mxu0  ;;  %v2537_v39 = vpop.f32.mrb[43].mxu1 }
 0x178   : > { %v3325_v34 = vpop.f32.mrb[44].mxu0  ;;  %v3327_v45 = vpop.f32.mrb[44].mxu1 }
 0x179   : > { %v2478_v38 = vpop.f32.mrb[45].mxu0  ;;  %v2540_v9 = vpop.f32.mrb[45].mxu1 }
 0x17a   : > { %v3331_v10 = vpop.f32.mrb[46].mxu0  ;;  %v3333_v20 = vpop.f32.mrb[46].mxu1 }
 0x17b   : > { %3486 = vst [vmem:[#allocation3_spill] sm:$0xff] %v3331_v10  ;;  %3487 = vst [vmem:[#allocation4_spill] sm:$0xff] %v3333_v20  ;;  %v2479_v59 = vpop.f32.mrb[47].mxu0  ;;  %v2541_v48 = vpop.f32.mrb[47].mxu1 }
 0x180   : > { %v3337_v39 = vpop.f32.mrb[48].mxu0  ;;  %v3339_v28 = vpop.f32.mrb[48].mxu1 }
 0x181   : > { %3488 = vst [vmem:[#allocation5_spill] sm:$0xff] %v3337_v39  ;;  %3489 = vst [vmem:[#allocation6_spill] sm:$0xff] %v3339_v28  ;;  %v2482_v43 = vpop.f32.mrb[49].mxu0  ;;  %v2544_v38 = vpop.f32.mrb[49].mxu1 }
 0x182   : > { %v919_v18 = vpop.f32.mrb[50].mxu0  ;;  %v1183_v9 = vpop.f32.mrb[50].mxu1 }
 0x183   : > { %v2483_v13 = vpop.f32.mrb[51].mxu0  ;;  %v2545_v8 = vpop.f32.mrb[51].mxu1 }
 0x188   : > { %v1373_v3 = vpop.f32.mrb[52].mxu0  ;;  %v1637_v33 = vpop.f32.mrb[52].mxu1 }
 0x189   : > { %v1739_v59 = vmax.f32 %v1373_v3, %v1637_v33  ;;  %v2558_v48 = vpop.f32.mrb[53].mxu0  ;;  %v2620_v62 = vpop.f32.mrb[53].mxu1 }
 0x18a   : > { %v1376_v23 = vpop.f32.mrb[54].mxu0  ;;  %v1640_v43 = vpop.f32.mrb[54].mxu1  ;;  %v3490_v62 = vmax.f32 %v3199_v56, %v3201_v57  ;;  %v3491_v57 = vmax.f32 %v3205_v60, %v3207_v61 }
 0x18b   : > { %v1764_v13 = vmax.f32 %v1186_v52, %v1739_v59  ;;  %v1740_v8 = vmax.f32 %v1376_v23, %v1640_v43  ;;  %v2559_v18 = vpop.f32.mrb[55].mxu0  ;;  %v2621_v38 = vpop.f32.mrb[55].mxu1 }
 0x18c   : > { %v3492_v18 = vmax.f32 %v3211_v1, %v3213_v2 }
 0x18d   : > { %v1796_v9 = vadd.f32 %v3348_v53, %v1764_v13  ;;  %v1765_v3 = vmax.f32 %v3490_v62, %v1740_v8 }
 0x18f   : > { %v1797_v33 = vadd.f32 %v3348_v53, %v1765_v3  ;;  %v1821_v39 = vmax.f32 %v1796_v9, 0.0 }
 0x190   : > { %v1381_v48 = vpop.f32.mrb[56].mxu0  ;;  %v1645_v28 = vpop.f32.mrb[56].mxu1 }
 0x191   : > { %v1822_v20 = vmax.f32 %v1797_v33, 0.0  ;;  %v1741_v10 = vmax.f32 %v1381_v48, %v1645_v28  ;;  %v2562_v50 = vpop.f32.mrb[57].mxu0  ;;  %v2624_v51 = vpop.f32.mrb[57].mxu1 }
 0x192   : > { %v1384_v52 = vpop.f32.mrb[58].mxu0  ;;  %v1648_v23 = vpop.f32.mrb[58].mxu1  ;;  %v3493_v51 = vmax.f32 %v3217_v6, %v3219_v7 }
 0x193   : > { %v2282_v56 = vpack.c.bf16 %v1822_v20, %v1821_v39  ;;  %v1766_v59 = vmax.f32 %v3491_v57, %v1741_v10  ;;  %v1742_v43 = vmax.f32 %v1384_v52, %v1648_v23  ;;  %v2563_v13 = vpop.f32.mrb[59].mxu0  ;;  %v2625_v8 = vpop.f32.mrb[59].mxu1  ;;  %v3494_v57 = vmax.f32 %v3223_v11, %v3225_v12 }
 0x195   : > { %2283 = vst [vmem:[%s3361_s22] sm:$0xff] %v2282_v56   ;;  %v1798_v28 = vadd.f32 %v3348_v53, %v1766_v59  ;;  %v1767_v38 = vmax.f32 %v3492_v18, %v1742_v43 }
 0x197   : > { %v1799_v9 = vadd.f32 %v3348_v53, %v1767_v38  ;;  %v1823_v20 = vmax.f32 %v1798_v28, 0.0 }
 0x198   : > { %v1389_v62 = vpop.f32.mrb[60].mxu0  ;;  %v1653_v3 = vpop.f32.mrb[60].mxu1 }
 0x199   : > { %v1824_v39 = vmax.f32 %v1799_v9, 0.0  ;;  %v1743_v33 = vmax.f32 %v1389_v62, %v1653_v3  ;;  %v2566_v60 = vpop.f32.mrb[61].mxu0  ;;  %v2628_v61 = vpop.f32.mrb[61].mxu1 }
 0x19a   : > { %v1392_v10 = vpop.f32.mrb[62].mxu0  ;;  %v1656_v48 = vpop.f32.mrb[62].mxu1  ;;  %v3496_v61 = vmax.f32 %v3235_v21, %v3237_v22 }
 0x19b   : > { %v2287_v50 = vpack.c.bf16 %v1824_v39, %v1823_v20  ;;  %v1768_v52 = vmax.f32 %v3493_v51, %v1743_v33  ;;  %v1744_v23 = vmax.f32 %v1392_v10, %v1656_v48  ;;  %v2567_v1 = vpop.f32.mrb[63].mxu0  ;;  %v2629_v2 = vpop.f32.mrb[63].mxu1  ;;  %v3495_v20 = vmax.f32 %v3229_v16, %v3231_v17 }
 0x19d   : > { %2339 = vst [vmem:[%s3361_s22 + $0x8] sm:$0xff] %v2287_v50   ;;  %v1800_v56 = vadd.f32 %v3348_v53, %v1768_v52  ;;  %v1769_v59 = vmax.f32 %v3494_v57, %v1744_v23 }
 0x19f   : > { %v1801_v43 = vadd.f32 %v3348_v53, %v1769_v59  ;;  %v1825_v28 = vmax.f32 %v1800_v56, 0.0  ;;  %v3497_v59 = vmax.f32 %v3241_v26, %v3243_v27 }
 0x1a0   : > { %v1397_v13 = vpop.f32.mrb[64].mxu0  ;;  %v1661_v8 = vpop.f32.mrb[64].mxu1 }
 0x1a1   : > { %v1826_v18 = vmax.f32 %v1801_v43, 0.0  ;;  %v1745_v38 = vmax.f32 %v1397_v13, %v1661_v8  ;;  %v2570_v6 = vpop.f32.mrb[65].mxu0  ;;  %v2632_v7 = vpop.f32.mrb[65].mxu1 }
 0x1a2   : > { %v1400_v9 = vpop.f32.mrb[66].mxu0  ;;  %v1664_v62 = vpop.f32.mrb[66].mxu1 }
 0x1a3   : > { %v2292_v3 = vpack.c.bf16 %v1826_v18, %v1825_v28  ;;  %v1770_v39 = vmax.f32 %v3495_v20, %v1745_v38  ;;  %v1746_v33 = vmax.f32 %v1400_v9, %v1664_v62  ;;  %v2571_v11 = vpop.f32.mrb[67].mxu0  ;;  %v2633_v12 = vpop.f32.mrb[67].mxu1  ;;  %v3498_v28 = vmax.f32 %v3247_v31, %v3249_v32 }
 0x1a4   : > { %v3499_v11 = vmax.f32 %v3253_v36, %v3255_v37 }
 0x1a5   : > { %2340 = vst [vmem:[%s3361_s22 + $0x10] sm:$0xff] %v2292_v3   ;;  %v1802_v60 = vadd.f32 %v3348_v53, %v1770_v39  ;;  %v1771_v10 = vmax.f32 %v3496_v61, %v1746_v33 }
 0x1a7   : > { %v1803_v48 = vadd.f32 %v3348_v53, %v1771_v10  ;;  %v1827_v52 = vmax.f32 %v1802_v60, 0.0  ;;  %v3500_v10 = vmax.f32 %v3259_v41, %v3261_v42 }
 0x1a8   : > { %v1405_v50 = vpop.f32.mrb[68].mxu0  ;;  %v1669_v51 = vpop.f32.mrb[68].mxu1 }
 0x1a9   : > { %v1828_v23 = vmax.f32 %v1803_v48, 0.0  ;;  %v1747_v1 = vmax.f32 %v1405_v50, %v1669_v51  ;;  %v2574_v16 = vpop.f32.mrb[69].mxu0  ;;  %v2636_v17 = vpop.f32.mrb[69].mxu1 }
 0x1aa   : > { %v1408_v2 = vpop.f32.mrb[70].mxu0  ;;  %v1672_v56 = vpop.f32.mrb[70].mxu1 }
 0x1ab   : > { %v2297_v57 = vpack.c.bf16 %v1828_v23, %v1827_v52  ;;  %v1772_v43 = vmax.f32 %v3497_v59, %v1747_v1  ;;  %v1748_v13 = vmax.f32 %v1408_v2, %v1672_v56  ;;  %v2575_v21 = vpop.f32.mrb[71].mxu0  ;;  %v2637_v22 = vpop.f32.mrb[71].mxu1 }
 0x1ac   : > { %v3502_v21 = vmax.f32 %v3271_v55, %v3273_v58 }
 0x1ad   : > { %2341 = vst [vmem:[%s3361_s22 + $0x18] sm:$0xff] %v2297_v57   ;;  %v1804_v8 = vadd.f32 %v3348_v53, %v1772_v43  ;;  %v1773_v18 = vmax.f32 %v3498_v28, %v1748_v13  ;;  %v3501_v57 = vmax.f32 %v3265_v46, %v3267_v47 }
 0x1af   : > { %v1805_v38 = vadd.f32 %v3348_v53, %v1773_v18  ;;  %v1829_v9 = vmax.f32 %v1804_v8, 0.0 }
 0x1b0   : > { %v1413_v6 = vpop.f32.mrb[72].mxu0  ;;  %v1677_v7 = vpop.f32.mrb[72].mxu1 }
 0x1b1   : > { %v1830_v62 = vmax.f32 %v1805_v38, 0.0  ;;  %v1749_v3 = vmax.f32 %v1413_v6, %v1677_v7  ;;  %v2578_v26 = vpop.f32.mrb[73].mxu0  ;;  %v2640_v27 = vpop.f32.mrb[73].mxu1 }
 0x1b2   : > { %v1416_v20 = vpop.f32.mrb[74].mxu0  ;;  %v1680_v39 = vpop.f32.mrb[74].mxu1  ;;  %v3503_v26 = vmax.f32 %v3277_v4, %v3279_v5 }
 0x1b3   : > { %v2302_v33 = vpack.c.bf16 %v1830_v62, %v1829_v9  ;;  %v1774_v12 = vmax.f32 %v3499_v11, %v1749_v3  ;;  %v1750_v60 = vmax.f32 %v1416_v20, %v1680_v39  ;;  %v2579_v31 = vpop.f32.mrb[75].mxu0  ;;  %v2641_v32 = vpop.f32.mrb[75].mxu1 }
 0x1b5   : > { %2342 = vst [vmem:[%s3361_s22 + $0x20] sm:$0xff] %v2302_v33   ;;  %v1806_v61 = vadd.f32 %v3348_v53, %v1774_v12  ;;  %v1775_v48 = vmax.f32 %v3500_v10, %v1750_v60  ;;  %v3504_v33 = vmax.f32 %v3283_v15, %v3285_v19 }
 0x1b7   : > { %v1807_v50 = vadd.f32 %v3348_v53, %v1775_v48  ;;  %v1831_v23 = vmax.f32 %v1806_v61, 0.0 }
 0x1b8   : > { %v1421_v51 = vpop.f32.mrb[76].mxu0  ;;  %v1685_v52 = vpop.f32.mrb[76].mxu1 }
 0x1b9   : > { %v1832_v1 = vmax.f32 %v1807_v50, 0.0  ;;  %v1751_v16 = vmax.f32 %v1421_v51, %v1685_v52  ;;  %v2582_v36 = vpop.f32.mrb[77].mxu0  ;;  %v2644_v37 = vpop.f32.mrb[77].mxu1  ;;  %v3505_v52 = vmax.f32 %v3289_v29, %v3291_v30 }
 0x1ba   : > { %v1424_v17 = vpop.f32.mrb[78].mxu0  ;;  %v1688_v2 = vpop.f32.mrb[78].mxu1  ;;  %v3506_v36 = vmax.f32 %v3295_v40, %v3297_v44 }
 0x1bb   : > { %v2307_v56 = vpack.c.bf16 %v1832_v1, %v1831_v23  ;;  %v1776_v59 = vmax.f32 %v3501_v57, %v1751_v16  ;;  %v1752_v43 = vmax.f32 %v1424_v17, %v1688_v2  ;;  %v2583_v41 = vpop.f32.mrb[79].mxu0  ;;  %v2645_v42 = vpop.f32.mrb[79].mxu1 }
 0x1bd   : > { %2343 = vst [vmem:[%s3361_s22 + $0x28] sm:$0xff] %v2307_v56   ;;  %v1808_v13 = vadd.f32 %v3348_v53, %v1776_v59  ;;  %v1777_v22 = vmax.f32 %v3502_v21, %v1752_v43  ;;  %v3507_v21 = vmax.f32 %v3301_v63, %v3303_v0 }
 0x1bf   : > { %v1809_v8 = vadd.f32 %v3348_v53, %v1777_v22  ;;  %v1833_v38 = vmax.f32 %v1808_v13, 0.0 }
 0x1c0   : > { %v1429_v28 = vpop.f32.mrb[80].mxu0  ;;  %v1693_v18 = vpop.f32.mrb[80].mxu1 }
 0x1c1   : > { %v1834_v6 = vmax.f32 %v1809_v8, 0.0  ;;  %v1753_v7 = vmax.f32 %v1429_v28, %v1693_v18  ;;  %v2586_v46 = vpop.f32.mrb[81].mxu0  ;;  %v2648_v47 = vpop.f32.mrb[81].mxu1  ;;  %v3508_v18 = vmax.f32 %v3307_v25, %v3309_v35 }
 0x1c2   : > { %v1432_v9 = vpop.f32.mrb[82].mxu0  ;;  %v1696_v62 = vpop.f32.mrb[82].mxu1 }
 0x1c3   : > { %v2312_v3 = vpack.c.bf16 %v1834_v6, %v1833_v38  ;;  %v1778_v27 = vmax.f32 %v3503_v26, %v1753_v7  ;;  %v1754_v20 = vmax.f32 %v1432_v9, %v1696_v62  ;;  %v2587_v55 = vpop.f32.mrb[83].mxu0  ;;  %v2649_v58 = vpop.f32.mrb[83].mxu1 }
 0x1c5   : > { %2344 = vst [vmem:[%s3361_s22 + $0x30] sm:$0xff] %v2312_v3   ;;  %v1810_v39 = vadd.f32 %v3348_v53, %v1778_v27  ;;  %v1779_v11 = vmax.f32 %v3504_v33, %v1754_v20  ;;  %v3509_v20 = vmax.f32 %v3313_v49, %v3315_v54  ;;  %v3510_v33 = vmax.f32 %v3319_v14, %v3321_v24 }
 0x1c7   : > { %v1811_v12 = vadd.f32 %v3348_v53, %v1779_v11  ;;  %v1835_v32 = vmax.f32 %v1810_v39, 0.0 }
 0x1c8   : > { %v1437_v60 = vpop.f32.mrb[84].mxu0  ;;  %v1701_v31 = vpop.f32.mrb[84].mxu1 }
 0x1c9   : > { %v1836_v61 = vmax.f32 %v1811_v12, 0.0  ;;  %v1755_v10 = vmax.f32 %v1437_v60, %v1701_v31  ;;  %v2590_v4 = vpop.f32.mrb[85].mxu0  ;;  %v2652_v5 = vpop.f32.mrb[85].mxu1 }
 0x1ca   : > { %v1440_v48 = vpop.f32.mrb[86].mxu0  ;;  %v1704_v50 = vpop.f32.mrb[86].mxu1 }
 0x1cb   : > { %v2317_v51 = vpack.c.bf16 %v1836_v61, %v1835_v32  ;;  %v1780_v23 = vmax.f32 %v3505_v52, %v1755_v10  ;;  %v1756_v1 = vmax.f32 %v1440_v48, %v1704_v50  ;;  %v2591_v15 = vpop.f32.mrb[87].mxu0  ;;  %v2653_v19 = vpop.f32.mrb[87].mxu1  ;;  %v3511_v50 = vmax.f32 %v3325_v34, %v3327_v45 }
 0x1cc   : > { %v3513_v15 = vld [vmem:[#allocation4_spill] sm:$0xff] }
 0x1cd   : > { %2345 = vst [vmem:[%s3361_s22 + $0x38] sm:$0xff] %v2317_v51   ;;  %v1812_v16 = vadd.f32 %v3348_v53, %v1780_v23  ;;  %v1781_v37 = vmax.f32 %v3506_v36, %v1756_v1  ;;  %v3512_v1 = vld [vmem:[#allocation3_spill] sm:$0xff] }
 0x1ce   : > { %v3514_v19 = vmax.f32 %v3512_v1, %v3513_v15 }
 0x1cf   : > { %v1813_v17 = vadd.f32 %v3348_v53, %v1781_v37  ;;  %v1837_v57 = vmax.f32 %v1812_v16, 0.0 }
 0x1d0   : > { %v1445_v2 = vpop.f32.mrb[88].mxu0  ;;  %v1709_v56 = vpop.f32.mrb[88].mxu1 }
 0x1d1   : > { %v1838_v59 = vmax.f32 %v1813_v17, 0.0  ;;  %v1757_v43 = vmax.f32 %v1445_v2, %v1709_v56  ;;  %v2594_v29 = vpop.f32.mrb[89].mxu0  ;;  %v2656_v30 = vpop.f32.mrb[89].mxu1 }
 0x1d2   : > { %v1448_v41 = vpop.f32.mrb[90].mxu0  ;;  %v1712_v42 = vpop.f32.mrb[90].mxu1  ;;  %v3515_v30 = vld [vmem:[#allocation5_spill] sm:$0xff] }
 0x1d3   : > { %v2322_v13 = vpack.c.bf16 %v1838_v59, %v1837_v57  ;;  %v1782_v22 = vmax.f32 %v3507_v21, %v1757_v43  ;;  %v1758_v8 = vmax.f32 %v1448_v41, %v1712_v42  ;;  %v2595_v40 = vpop.f32.mrb[91].mxu0  ;;  %v2657_v44 = vpop.f32.mrb[91].mxu1  ;;  %v3516_v41 = vld [vmem:[#allocation6_spill] sm:$0xff] }
 0x1d4   : > { %v3517_v42 = vmax.f32 %v3515_v30, %v3516_v41 }
 0x1d5   : > { %2346 = vst [vmem:[%s3361_s22 + $0x40] sm:$0xff] %v2322_v13   ;;  %v1814_v28 = vadd.f32 %v3348_v53, %v1782_v22  ;;  %v1783_v38 = vmax.f32 %v3508_v18, %v1758_v8 }
 0x1d7   : > { %v1815_v6 = vadd.f32 %v3348_v53, %v1783_v38  ;;  %v1839_v47 = vmax.f32 %v1814_v28, 0.0 }
 0x1d8   : > { %v1453_v7 = vpop.f32.mrb[92].mxu0  ;;  %v1717_v46 = vpop.f32.mrb[92].mxu1 }
 0x1d9   : > { %v1840_v9 = vmax.f32 %v1815_v6, 0.0  ;;  %v1759_v62 = vmax.f32 %v1453_v7, %v1717_v46  ;;  %v2598_v63 = vpop.f32.mrb[93].mxu0  ;;  %v2660_v0 = vpop.f32.mrb[93].mxu1 }
 0x1da   : > { %v1456_v3 = vpop.f32.mrb[94].mxu0  ;;  %v1720_v26 = vpop.f32.mrb[94].mxu1 }
 0x1db   : > { %v2327_v27 = vpack.c.bf16 %v1840_v9, %v1839_v47  ;;  %v1784_v55 = vmax.f32 %v3509_v20, %v1759_v62  ;;  %v1760_v58 = vmax.f32 %v1456_v3, %v1720_v26  ;;  %v2599_v25 = vpop.f32.mrb[95].mxu0  ;;  %v2661_v35 = vpop.f32.mrb[95].mxu1 }
 0x1dd   : > { %2347 = vst [vmem:[%s3361_s22 + $0x48] sm:$0xff] %v2327_v27   ;;  %v1816_v39 = vadd.f32 %v3348_v53, %v1784_v55  ;;  %v1785_v11 = vmax.f32 %v3510_v33, %v1760_v58 }
 0x1df   : > { %v1817_v12 = vadd.f32 %v3348_v53, %v1785_v11  ;;  %v1841_v32 = vmax.f32 %v1816_v39, 0.0 }
 0x1e0   : > { %v1461_v60 = vpop.f32.mrb[96].mxu0  ;;  %v1725_v31 = vpop.f32.mrb[96].mxu1 }
 0x1e1   : > { %v1842_v61 = vmax.f32 %v1817_v12, 0.0  ;;  %v1761_v10 = vmax.f32 %v1461_v60, %v1725_v31  ;;  %v2602_v49 = vpop.f32.mrb[97].mxu0  ;;  %v2664_v54 = vpop.f32.mrb[97].mxu1 }
 0x1e2   : > { %v1464_v4 = vpop.f32.mrb[98].mxu0  ;;  %v1728_v5 = vpop.f32.mrb[98].mxu1 }
 0x1e3   : > { %v2332_v48 = vpack.c.bf16 %v1842_v61, %v1841_v32  ;;  %v1786_v51 = vmax.f32 %v3511_v50, %v1761_v10  ;;  %v1762_v52 = vmax.f32 %v1464_v4, %v1728_v5  ;;  %v2603_v14 = vpop.f32.mrb[99].mxu0  ;;  %v2665_v24 = vpop.f32.mrb[99].mxu1 }
 0x1e5   : > { %2348 = vst [vmem:[%s3361_s22 + $0x50] sm:$0xff] %v2332_v48   ;;  %v1818_v23 = vadd.f32 %v3348_v53, %v1786_v51  ;;  %v1787_v16 = vmax.f32 %v3514_v19, %v1762_v52 }
 0x1e7   : > { %v1819_v36 = vadd.f32 %v3348_v53, %v1787_v16  ;;  %v1843_v2 = vmax.f32 %v1818_v23, 0.0 }
 0x1e8   : > { %v1469_v37 = vpop.f32.mrb[100].mxu0  ;;  %v1733_v17 = vpop.f32.mrb[100].mxu1 }
 0x1e9   : > { %v1844_v56 = vmax.f32 %v1819_v36, 0.0  ;;  %v1763_v34 = vmax.f32 %v1469_v37, %v1733_v17  ;;  %v2606_v45 = vpop.f32.mrb[101].mxu0  ;;  %v2668_v57 = vpop.f32.mrb[101].mxu1 }
 0x1ea   : > { %v1472_v59 = vpop.f32.mrb[102].mxu0  ;;  %v1736_v43 = vpop.f32.mrb[102].mxu1 }
 0x1eb   : > { %v2337_v29 = vpack.c.bf16 %v1844_v56, %v1843_v2  ;;  %v1788_v13 = vmax.f32 %v3517_v42, %v1763_v34  ;;  %v2607_v21 = vpop.f32.mrb[103].mxu0  ;;  %v2669_v22 = vpop.f32.mrb[103].mxu1 }
 0x1ed   : > { %2349 = vst [vmem:[%s3361_s22 + $0x58] sm:$0xff] %v2337_v29   ;;  %v1820_v8 = vadd.f32 %v3348_v53, %v1788_v13 }
 0x1ef   : > { %v1845_v40 = vmax.f32 %v1820_v8, 0.0 }
 0x1f1   : > { %v2278_v44 = vpack.c.bf16 %v1845_v40, %v1845_v40 }
 0x1f3   : > { %1971 = vst [vmem:[%s3361_s22 + $0x60] sm:$0xf] %v2278_v44 }
 0x1f4 PF: > { %p10_p9 = scmp.ge.s32.totalorder %s2820_s16, 4   ;;  %s3518_s12 = smov %s2774_s13 }
 0x1f5   : > { %s3519_s13 = smov %s2829_s19  ;;  %s3520_s14 = smov %s2820_s16 }
 0x1f6   :  { %12 = sbr.rel (!%p10_p9) target bundleno = 2 (0x2), region = 111 }

// kernel: _lambda_.4
= control target key start
LH: loop header
LB: loop body
LE: loop exit
PB: predicated region body
PF: predicated region fallthrough
CT: control target
= control target key end

     0   :  { %s957_s12 = smov 0   ;;  %s959_s13 = smov 0   ;;  %s1174_s0 = inlined_call_operand.vmem [shape: bf16[2,2,64,150], index: 0, kind: input, shape index: {}]   ;;  %s1175_s1 = inlined_call_operand.vmem [shape: bf16[150,128], index: 1, kind: input, shape index: {}]   ;;  %s1176_s2 = inlined_call_operand.vmem [shape: f32[1,128], index: 2, kind: input, shape index: {}]   ;;  %s1177_s3 = inlined_call_operand.vmem [shape: bf16[64,128], index: 3, kind: output, shape index: {}]  }
   0x1   :  { %s961_s14 = smov 0  }
   0x2 LB: > { %s771_s15 = sadd.s32 4294967295, %s934_s14   ;;  %s974_s16 = sadd.s32 1, %s934_s14   ;;  %s934_s14 = sphi %s961_s14, %s1180_s14   ;;  %s930_s13 = sphi %s959_s13, %s1179_s13   ;;  %s926_s12 = sphi %s957_s12, %s1178_s12  }
   0x3   : > { %s17_s17 = ssub.s32 %s934_s14, %s974_s16  ;;  %s20_s18 = sadd.s32 1, %s930_s13 }
   0x4   : > { %p18_p0 = scmp.eq.s32.totalorder %s17_s17, 0  ;;  %p27_p1 = scmp.ne.s32.totalorder %s930_s13, %s926_s12 }
   0x5   : > { %p28_p2 = scmp.eq.s32.totalorder %s934_s14, 0  ;;  %p774_p4 = scmp.ge.s32.totalorder %s934_s14, 2 }
   0x6   : > { %s983_s19 = scalar_select %p18_p0, %s930_s13, %s20_s18  }
   0x7   : > { %p29_p3 = por %p28_p2, %p27_p1  ;;  %127 = sbr.rel (%p774_p4) target bundleno = 26 (0x1a), region = 24 }
   0xe   : > { %130 = sbr.rel (!%p29_p3) target bundleno = 26 (0x1a), region = 28  ;;  %s132_s20 = sand.u32 (%p29_p3), 1, %s930_s13  }
   0xf   : > { %s837_s21 = sshll.u32 (%p29_p3), %s934_s14, 5  ;;  %s775_s22 = sshll.u32 (%p29_p3), %s132_s20, 7 }
  0x10   : > { %s991_s25 = scalar_lea.vmem (%p29_p3), %s1174_s0, %s837_s21  ;;  %s134_s26 = scalar_lea.vmem (%p29_p3), [#allocation2], %s775_s22 }
  0x11   : > { %v196_v0 = vld [vmem:[%s991_s25] sm:$0xff] (%p29_p3)  ;;  %v198_v1 = vld [vmem:[%s991_s25 + $0x8] sm:$0xff] (%p29_p3)  ;;  %v200_v2 = vld [vmem:[%s991_s25 + $0x10] sm:$0xff] (%p29_p3) }
  0x12   : > { %197 = vst [vmem:[%s134_s26] sm:$0xff] (%p29_p3), %v196_v0  ;;  %199 = vst [vmem:[%s134_s26 + $0x8] sm:$0xff] (%p29_p3), %v198_v1  ;;  %v202_v3 = vld [vmem:[%s991_s25 + $0x18] sm:$0xff] (%p29_p3)  ;;  %v204_v4 = vld [vmem:[%s991_s25 + $0x40] sm:$0xff] (%p29_p3) }
  0x13   : > { %201 = vst [vmem:[%s134_s26 + $0x10] sm:$0xff] (%p29_p3), %v200_v2  ;;  %v206_v5 = vld [vmem:[%s991_s25 + $0x48] sm:$0xff] (%p29_p3)  ;;  %203 = vst [vmem:[%s134_s26 + $0x18] sm:$0xff] (%p29_p3), %v202_v3  ;;  %v208_v6 = vld [vmem:[%s991_s25 + $0x50] sm:$0xff] (%p29_p3) }
  0x14   : > { %205 = vst [vmem:[%s134_s26 + $0x20] sm:$0xff] (%p29_p3), %v204_v4  ;;  %207 = vst [vmem:[%s134_s26 + $0x28] sm:$0xff] (%p29_p3), %v206_v5  ;;  %v210_v7 = vld [vmem:[%s991_s25 + $0x58] sm:$0xff] (%p29_p3)  ;;  %v212_v8 = vld [vmem:[%s991_s25 + $0x80] sm:$0xff] (%p29_p3) }
  0x15   : > { %209 = vst [vmem:[%s134_s26 + $0x30] sm:$0xff] %v208_v6  ;;  %211 = vst [vmem:[%s134_s26 + $0x38] sm:$0xff] %v210_v7  ;;  %v214_v9 = vld [vmem:[%s991_s25 + $0x88] sm:$0xff]  ;;  %v216_v10 = vld [vmem:[%s991_s25 + $0x90] sm:$0xff] }
  0x16   : > { %213 = vst [vmem:[%s134_s26 + $0x40] sm:$0xff] %v212_v8  ;;  %v218_v11 = vld [vmem:[%s991_s25 + $0x98] sm:$0xff]  ;;  %215 = vst [vmem:[%s134_s26 + $0x48] sm:$0xff] %v214_v9  ;;  %v220_v12 = vld [vmem:[%s991_s25 + $0xc0] sm:$0xff] }
  0x17   : > { %217 = vst [vmem:[%s134_s26 + $0x50] sm:$0xff] %v216_v10  ;;  %219 = vst [vmem:[%s134_s26 + $0x58] sm:$0xff] %v218_v11  ;;  %v222_v13 = vld [vmem:[%s991_s25 + $0xc8] sm:$0xff]  ;;  %v224_v14 = vld [vmem:[%s991_s25 + $0xd0] sm:$0xff] }
  0x18   : > { %221 = vst [vmem:[%s134_s26 + $0x60] sm:$0xff] %v220_v12  ;;  %223 = vst [vmem:[%s134_s26 + $0x68] sm:$0xff] %v222_v13  ;;  %v226_v15 = vld [vmem:[%s991_s25 + $0xd8] sm:$0xff] }
  0x19   : > { %225 = vst [vmem:[%s134_s26 + $0x70] sm:$0xff] %v224_v14  ;;  %227 = vst [vmem:[%s134_s26 + $0x78] sm:$0xff] %v226_v15 }
  0x1a PF: > { %p779_p5 = scmp.ge.s32.totalorder %s934_s14, 1  ;;  %p232_p6 = scmp.lt.s32.totalorder %s934_s14, 3 }
  0x1c   : > { %p233_p7 = pnand %p779_p5, %p232_p6 }
  0x1d   : > { %v1014_v16 = vld [vmem:[%s1175_s1] sm:$0xff] (!%p233_p7)   ;;  %v936_v17 = vmov (!%p233_p7), 0   ;;  %v1023_v18 = vld [vmem:[%s1175_s1 + $0x8] sm:$0xff] (!%p233_p7)   ;;  %s239_s4 = sand.u32 (!%p233_p7), 1, %s926_s12   ;;  %v1033_v19 = vld [vmem:[%s1175_s1 + $0x10] sm:$0xff] (!%p233_p7)   ;;  %vm368_vm0 = vcmask (!%p233_p7), 179200  }
  0x1e   : > { %236 = sbr.rel (%p233_p7) target bundleno = 343 (0x157), region = 66  ;;  %379 = vmatprep.subr.bf16.mxu0 (!%p233_p7), %v936_v17  ;;  %457 = vmatprep.subr.bf16.mxu1 (!%p233_p7), %v936_v17  ;;  %s780_s5 = sshll.u32 (!%p233_p7), %s239_s4, 7  ;;  %v1044_v20 = vld [vmem:[%s1175_s1 + $0x18] sm:$0xff] (!%p233_p7)   ;;  %v1056_v23 = vld [vmem:[%s1175_s1 + $0x20] sm:$0xff] (!%p233_p7)   ;;  %v1066_v24 = vld [vmem:[%s1175_s1 + $0x28] sm:$0xff] (!%p233_p7)   ;;  %vm375_vm1 = vcmask (!%p233_p7), 1042432  }
  0x1f   : > { %380 = vmatpush1.bf16.msra.mxu0 (!%p233_p7), %v1014_v16  ;;  %458 = vmatpush1.bf16.msra.mxu1 (!%p233_p7), %v1014_v16  ;;  %s1037_s8 = scalar_lea.vmem (!%p233_p7), [#allocation2], %s780_s5  ;;  %v1075_v25 = vld [vmem:[%s1175_s1 + $0x30] sm:$0xff] (!%p233_p7)   ;;  %v1084_v26 = vld [vmem:[%s1175_s1 + $0x38] sm:$0xff] (!%p233_p7)   ;;  %v886_v27 = vld [vmem:[%s1175_s1 + $0x40] sm:$0xff] (!%p233_p7)   ;;  %s781_s28 = sshll.u32 (!%p233_p7), %s771_s15, 2 }
  0x20   : > { %381 = vmatprep.subr.bf16.mxu0 (!%p233_p7), %v936_v17  ;;  %459 = vmatprep.subr.bf16.mxu1 (!%p233_p7), %v936_v17  ;;  %v890_v21 = vld [vmem:[%s1037_s8 + $0x4] ss:$8 sps:$4 sm:$0xff] (!%p233_p7)   ;;  %v887_v28 = vld [vmem:[%s1175_s1 + $0x48] ss:$0 sps:$4 sm:$0x77] (!%p233_p7)   ;;  %p264_p8 = scmp.lt.s32.totalorder (!%p233_p7), %s781_s28, 7 }
  0x21   : > { %797 = vmatprep.mubr.msk.bf16.mxu0 (!%p233_p7), %vm368_vm0, %v890_v21  ;;  %v893_v22 = vld [vmem:[%s1037_s8 + $0x24] ss:$8 sps:$4 sm:$0xff] (!%p233_p7)   ;;  %v377_v29 = vsel (!%p233_p7), %vm375_vm1, %v887_v28, 0  ;;  %v888_v30 = vld [vmem:[%s1037_s8] ss:$8 sps:$4 sm:$0xff] (!%p233_p7)  }
  0x22   : > { %807 = vmatprep.mubr.msk.bf16.mxu1 (!%p233_p7), %vm368_vm0, %v893_v22  ;;  %v891_v31 = vld [vmem:[%s1037_s8 + $0x20] ss:$8 sps:$4 sm:$0xff] (!%p233_p7)   ;;  %v894_v32 = vld [vmem:[%s1037_s8 + $0x14] ss:$8 sps:$4 sm:$0xff] (!%p233_p7)   ;;  %v898_v34 = vld [vmem:[%s1037_s8 + $0x10] ss:$8 sps:$4 sm:$0xff] (!%p233_p7)  }
  0x23   : > { %382 = vmatpush1.bf16.msra.mxu0 (!%p233_p7), %v1023_v18  ;;  %460 = vmatpush1.bf16.msra.mxu1 (!%p233_p7), %v1023_v18  ;;  %v896_v33 = vld [vmem:[%s1037_s8 + $0x34] ss:$8 sps:$4 sm:$0xff] (!%p233_p7)   ;;  %v899_v35 = vld [vmem:[%s1037_s8 + $0x30] ss:$8 sps:$4 sm:$0xff] (!%p233_p7)   ;;  %v902_v36 = vld [vmem:[%s1037_s8 + $0x44] ss:$8 sps:$4 sm:$0xff] (!%p233_p7)  }
  0x24   : > { %383 = vmatprep.subr.bf16.mxu0 (!%p233_p7), %v936_v17  ;;  %461 = vmatprep.subr.bf16.mxu1 (!%p233_p7), %v936_v17  ;;  %v905_v37 = vld [vmem:[%s1037_s8 + $0x64] ss:$8 sps:$4 sm:$0xff] (!%p233_p7)   ;;  %v900_v38 = vld [vmem:[%s1037_s8 + $0x40] ss:$8 sps:$4 sm:$0xff] (!%p233_p7)   ;;  %v906_v40 = vld [vmem:[%s1037_s8 + $0x54] ss:$8 sps:$4 sm:$0xff] (!%p233_p7)  }
  0x25   : > { %v903_v39 = vld [vmem:[%s1037_s8 + $0x60] ss:$8 sps:$4 sm:$0xff]   ;;  %v908_v41 = vld [vmem:[%s1037_s8 + $0x74] ss:$8 sps:$4 sm:$0xff]   ;;  %v910_v42 = vld [vmem:[%s1037_s8 + $0x50] ss:$8 sps:$4 sm:$0xff]  }
  0x26   : > { %v911_v43 = vld [vmem:[%s1037_s8 + $0x70] ss:$8 sps:$4 sm:$0xff]   ;;  %v829_v5 = vld [vmem:[%s1176_s2] ss:$0 sm:$0xff]  ;;  %s1182_s28 = smov (!%p264_p8, %s781_s28), 7 }
  0x27   : > { %384 = vmatpush1.bf16.msra.mxu0 %v1033_v19  ;;  %462 = vmatpush1.bf16.msra.mxu1 %v1033_v19  ;;  %s782_s14 = sshll.u32 %s1182_s28, 2 }
  0x28   : > { %385 = vmatprep.subr.bf16.mxu0 %v936_v17  ;;  %463 = vmatprep.subr.bf16.mxu1 %v936_v17  ;;  %s267_s5 = scalar_lea.vmem %s1177_s3, %s782_s14 }
  0x2b   : > { %386 = vmatpush1.bf16.msra.mxu0 %v1044_v20  ;;  %464 = vmatpush1.bf16.msra.mxu1 %v1044_v20 }
  0x2c   : > { %387 = vmatprep.subr.bf16.mxu0 %v936_v17  ;;  %465 = vmatprep.subr.bf16.mxu1 %v936_v17 }
  0x2f   : > { %388 = vmatpush1.bf16.msra.mxu0 %v1056_v23  ;;  %466 = vmatpush1.bf16.msra.mxu1 %v1056_v23 }
  0x30   : > { %389 = vmatprep.subr.bf16.mxu0 %v936_v17  ;;  %467 = vmatprep.subr.bf16.mxu1 %v936_v17 }
  0x33   : > { %390 = vmatpush1.bf16.msra.mxu0 %v1066_v24  ;;  %468 = vmatpush1.bf16.msra.mxu1 %v1066_v24 }
  0x34   : > { %391 = vmatprep.subr.bf16.mxu0 %v936_v17  ;;  %469 = vmatprep.subr.bf16.mxu1 %v936_v17 }
  0x37   : > { %392 = vmatpush1.bf16.msra.mxu0 %v1075_v25  ;;  %470 = vmatpush1.bf16.msra.mxu1 %v1075_v25 }
  0x38   : > { %393 = vmatprep.subr.bf16.mxu0 %v936_v17  ;;  %471 = vmatprep.subr.bf16.mxu1 %v936_v17 }
  0x3b   : > { %394 = vmatpush1.bf16.msra.mxu0 %v1084_v26  ;;  %472 = vmatpush1.bf16.msra.mxu1 %v1084_v26 }
  0x3c   : > { %395 = vmatprep.subr.bf16.mxu0 %v936_v17  ;;  %473 = vmatprep.subr.bf16.mxu1 %v936_v17 }
  0x3f   : > { %396 = vmatpush1.bf16.msra.mxu0 %v886_v27  ;;  %474 = vmatpush1.bf16.msra.mxu1 %v886_v27 }
  0x40   : > { %397 = vmatprep.subr.bf16.mxu0 %v936_v17  ;;  %475 = vmatprep.subr.bf16.mxu1 %v936_v17 }
  0x43   : > { %398 = vmatpush1.bf16.msra.mxu0 %v377_v29  ;;  %476 = vmatpush1.bf16.msra.mxu1 %v377_v29 }
  0x44   : > { %539 = vmatprep.subr.bf16.mxu0 %v936_v17  ;;  %617 = vmatprep.subr.bf16.mxu1 %v936_v17 }
  0x46   : > { %412 = vmatmul.mubr.bf16.vlgmr.msra.gmra.mrb[0].mxu0 %v888_v30  ;;  %490 = vmatmul.mubr.bf16.vlgmr.msra.gmra.mrb[0].mxu1 %v891_v31 }
  0x47   : > { %540 = vmatpush1.bf16.msra.mxu0 %v1014_v16  ;;  %618 = vmatpush1.bf16.msra.mxu1 %v1014_v16 }
  0x48   : > { %541 = vmatprep.subr.bf16.mxu0 %v936_v17  ;;  %619 = vmatprep.subr.bf16.mxu1 %v936_v17 }
  0x49   : > { %798 = vmatprep.mubr.msk.bf16.mxu0 %vm368_vm0, %v894_v32  ;;  %808 = vmatprep.mubr.msk.bf16.mxu1 %vm368_vm0, %v896_v33 }
  0x4b   : > { %542 = vmatpush1.bf16.msra.mxu0 %v1023_v18  ;;  %620 = vmatpush1.bf16.msra.mxu1 %v1023_v18 }
  0x4c   : > { %543 = vmatprep.subr.bf16.mxu0 %v936_v17  ;;  %621 = vmatprep.subr.bf16.mxu1 %v936_v17 }
  0x4e   : > { %420 = vmatmul.mubr.bf16.gmra.mrb[4].mxu0 %v898_v34  ;;  %498 = vmatmul.mubr.bf16.gmra.mrb[4].mxu1 %v899_v35 }
  0x4f   : > { %544 = vmatpush1.bf16.msra.mxu0 %v1033_v19  ;;  %622 = vmatpush1.bf16.msra.mxu1 %v1033_v19 }
  0x50   : > { %545 = vmatprep.subr.bf16.mxu0 %v936_v17  ;;  %623 = vmatprep.subr.bf16.mxu1 %v936_v17 }
  0x51   : > { %817 = vmatprep.mubr.msk.bf16.mxu0 %vm368_vm0, %v902_v36  ;;  %827 = vmatprep.mubr.msk.bf16.mxu1 %vm368_vm0, %v905_v37 }
  0x53   : > { %546 = vmatpush1.bf16.msra.mxu0 %v1044_v20  ;;  %624 = vmatpush1.bf16.msra.mxu1 %v1044_v20 }
  0x54   : > { %547 = vmatprep.subr.bf16.mxu0 %v936_v17  ;;  %625 = vmatprep.subr.bf16.mxu1 %v936_v17 }
  0x57   : > { %548 = vmatpush1.bf16.msra.mxu0 %v1056_v23  ;;  %626 = vmatpush1.bf16.msra.mxu1 %v1056_v23 }
  0x58   : > { %549 = vmatprep.subr.bf16.mxu0 %v936_v17  ;;  %627 = vmatprep.subr.bf16.mxu1 %v936_v17 }
  0x5b   : > { %550 = vmatpush1.bf16.msra.mxu0 %v1066_v24  ;;  %628 = vmatpush1.bf16.msra.mxu1 %v1066_v24 }
  0x5c   : > { %551 = vmatprep.subr.bf16.mxu0 %v936_v17  ;;  %629 = vmatprep.subr.bf16.mxu1 %v936_v17 }
  0x5f   : > { %552 = vmatpush1.bf16.msra.mxu0 %v1075_v25  ;;  %630 = vmatpush1.bf16.msra.mxu1 %v1075_v25 }
  0x60   : > { %553 = vmatprep.subr.bf16.mxu0 %v936_v17  ;;  %631 = vmatprep.subr.bf16.mxu1 %v936_v17 }
  0x63   : > { %554 = vmatpush1.bf16.msra.mxu0 %v1084_v26  ;;  %632 = vmatpush1.bf16.msra.mxu1 %v1084_v26 }
  0x64   : > { %555 = vmatprep.subr.bf16.mxu0 %v936_v17  ;;  %633 = vmatprep.subr.bf16.mxu1 %v936_v17 }
  0x67   : > { %556 = vmatpush1.bf16.msra.mxu0 %v886_v27  ;;  %634 = vmatpush1.bf16.msra.mxu1 %v886_v27 }
  0x68   : > { %557 = vmatprep.subr.bf16.mxu0 %v936_v17  ;;  %635 = vmatprep.subr.bf16.mxu1 %v936_v17 }
  0x6b   : > { %558 = vmatpush1.bf16.msra.mxu0 %v377_v29  ;;  %636 = vmatpush1.bf16.msra.mxu1 %v377_v29 }
  0x6e   : > { %572 = vmatmul.mubr.bf16.vlgmr.msra.gmra.mrb[8].mxu0 %v900_v38  ;;  %650 = vmatmul.mubr.bf16.vlgmr.msra.gmra.mrb[8].mxu1 %v903_v39 }
  0x6f   : > { %818 = vmatprep.mubr.msk.bf16.mxu0 %vm368_vm0, %v906_v40  ;;  %828 = vmatprep.mubr.msk.bf16.mxu1 %vm368_vm0, %v908_v41 }
  0x76   : > { %580 = vmatmul.mubr.bf16.gmra.mrb[12].mxu0 %v910_v42  ;;  %658 = vmatmul.mubr.bf16.gmra.mrb[12].mxu1 %v911_v43 }
 0x119   : > { %v413_v44 = vpop.f32.mrb[0].mxu0  ;;  %v491_v45 = vpop.f32.mrb[0].mxu1 }
 0x11a   : > { %v506_v46 = vmax.f32 %v413_v44, %v491_v45  ;;  %v415_v47 = vpop.f32.mrb[1].mxu0  ;;  %v493_v48 = vpop.f32.mrb[1].mxu1 }
 0x11b   : > { %v416_v49 = vpop.f32.mrb[2].mxu0  ;;  %v494_v50 = vpop.f32.mrb[2].mxu1 }
 0x11c   : > { %v507_v51 = vmax.f32 %v416_v49, %v494_v50  ;;  %v418_v52 = vpop.f32.mrb[3].mxu0  ;;  %v496_v53 = vpop.f32.mrb[3].mxu1 }
 0x121   : > { %v421_v54 = vpop.f32.mrb[4].mxu0  ;;  %v499_v55 = vpop.f32.mrb[4].mxu1 }
 0x122   : > { %v508_v56 = vmax.f32 %v421_v54, %v499_v55  ;;  %v423_v57 = vpop.f32.mrb[5].mxu0  ;;  %v501_v58 = vpop.f32.mrb[5].mxu1 }
 0x123   : > { %v424_v59 = vpop.f32.mrb[6].mxu0  ;;  %v502_v60 = vpop.f32.mrb[6].mxu1 }
 0x124   : > { %v509_v61 = vmax.f32 %v424_v59, %v502_v60  ;;  %v426_v62 = vpop.f32.mrb[7].mxu0  ;;  %v504_v63 = vpop.f32.mrb[7].mxu1 }
 0x141   : > { %v573_v0 = vpop.f32.mrb[8].mxu0  ;;  %v651_v1 = vpop.f32.mrb[8].mxu1 }
 0x142   : > { %v666_v2 = vmax.f32 %v573_v0, %v651_v1  ;;  %v575_v3 = vpop.f32.mrb[9].mxu0  ;;  %v653_v4 = vpop.f32.mrb[9].mxu1 }
 0x143   : > { %v576_v6 = vpop.f32.mrb[10].mxu0  ;;  %v654_v7 = vpop.f32.mrb[10].mxu1 }
 0x144   : > { %v670_v8 = vmax.f32 %v506_v46, %v666_v2  ;;  %v667_v9 = vmax.f32 %v576_v6, %v654_v7  ;;  %v578_v10 = vpop.f32.mrb[11].mxu0  ;;  %v656_v11 = vpop.f32.mrb[11].mxu1 }
 0x146   : > { %v681_v12 = vadd.f32 %v829_v5, %v670_v8  ;;  %v671_v13 = vmax.f32 %v507_v51, %v667_v9 }
 0x148   : > { %v682_v14 = vadd.f32 %v829_v5, %v671_v13  ;;  %v685_v17 = vmax.f32 %v681_v12, 0.0 }
 0x149   : > { %v581_v15 = vpop.f32.mrb[12].mxu0  ;;  %v659_v16 = vpop.f32.mrb[12].mxu1 }
 0x14a   : > { %v686_v18 = vmax.f32 %v682_v14, 0.0  ;;  %v668_v19 = vmax.f32 %v581_v15, %v659_v16  ;;  %v583_v20 = vpop.f32.mrb[13].mxu0  ;;  %v661_v21 = vpop.f32.mrb[13].mxu1 }
 0x14b   : > { %v584_v22 = vpop.f32.mrb[14].mxu0  ;;  %v662_v23 = vpop.f32.mrb[14].mxu1 }
 0x14c   : > { %v845_v24 = vpack.c.bf16 %v686_v18, %v685_v17  ;;  %v672_v25 = vmax.f32 %v508_v56, %v668_v19  ;;  %v669_v26 = vmax.f32 %v584_v22, %v662_v23  ;;  %v586_v27 = vpop.f32.mrb[15].mxu0  ;;  %v664_v28 = vpop.f32.mrb[15].mxu1 }
 0x14e   : > { %846 = vst [vmem:[%s267_s5] sm:$0xff] %v845_v24   ;;  %v683_v29 = vadd.f32 %v829_v5, %v672_v25  ;;  %v673_v30 = vmax.f32 %v509_v61, %v669_v26 }
 0x150   : > { %v684_v31 = vadd.f32 %v829_v5, %v673_v30  ;;  %v687_v32 = vmax.f32 %v683_v29, 0.0 }
 0x152   : > { %v688_v33 = vmax.f32 %v684_v31, 0.0 }
 0x154   : > { %v850_v34 = vpack.c.bf16 %v688_v33, %v687_v32 }
 0x156   : > { %852 = vst [vmem:[%s267_s5 + $0x8] sm:$0xff] %v850_v34  }
 0x157 PF: > { %p10_p9 = scmp.ge.s32.totalorder %s974_s16, 4   ;;  %s1178_s12 = smov %s930_s13 }
 0x158   : > { %s1179_s13 = smov %s983_s19  ;;  %s1180_s14 = smov %s974_s16 }
 0x159   :  { %12 = sbr.rel (!%p10_p9) target bundleno = 2 (0x2), region = 108 }

// kernel: _lambda_.5
= control target key start
LH: loop header
LB: loop body
LE: loop exit
PB: predicated region body
PF: predicated region fallthrough
CT: control target
= control target key end

     0   :  { %v757_v0 = vmov 0   ;;  %vm249_vm0 = vcmask 130048   ;;  %v758_v32 = vmov 0.0   ;;  %vm759_vm1 = vmmov 0   ;;  %s968_s1 = inlined_call_operand.vmem [shape: bf16[400,128], index: 1, kind: input, shape index: {}]   ;;  %s969_s0 = inlined_call_operand.vmem [shape: bf16[8,400], index: 0, kind: input, shape index: {}]   ;;  %s970_s3 = inlined_call_operand.vmem [shape: bf16[128,128], index: 3, kind: input, shape index: {}]   ;;  %s971_s5 = inlined_call_operand.vmem [shape: bf16[128,128], index: 5, kind: input, shape index: {}]   ;;  %s972_s2 = inlined_call_operand.vmem [shape: f32[1,128], index: 2, kind: input, shape index: {}]   ;;  %s973_s4 = inlined_call_operand.vmem [shape: f32[1,128], index: 4, kind: input, shape index: {}]   ;;  %s974_s6 = inlined_call_operand.vmem [shape: f32[1,128], index: 6, kind: input, shape index: {}]   ;;  %s975_s7 = inlined_call_operand.vmem [shape: f32[8,128], index: 7, kind: output, shape index: {}]  }
   0x1   :  { %293 = vmatprep.subr.bf16.mxu1 %v757_v0  ;;  %v708_v1 = vld [vmem:[%s968_s1 + $0x40] sm:$0xff]   ;;  %v711_v4 = vld [vmem:[%s968_s1 + $0x48] sm:$0xff]   ;;  %v714_v7 = vld [vmem:[%s968_s1 + $0x50] sm:$0xff]  }
   0x2   :  { %v709_v2 = vld [vmem:[%s968_s1 + $0x80] sm:$0xff]   ;;  %625 = vmatprep.subr.bf16.mxu0 %v708_v1  ;;  %v712_v5 = vld [vmem:[%s968_s1 + $0x88] sm:$0xff]   ;;  %v715_v8 = vld [vmem:[%s968_s1 + $0x90] sm:$0xff]  }
   0x3   :  { %v710_v3 = vld [vmem:[%s968_s1] sm:$0xff]   ;;  %294 = vmatpush1.bf16.msra.mxu1 %v709_v2  ;;  %v713_v6 = vld [vmem:[%s968_s1 + $0x8] sm:$0xff]   ;;  %v716_v9 = vld [vmem:[%s968_s1 + $0x10] sm:$0xff]  }
   0x4   :  { %626 = vmatpush3.bf16.msra.mxu0 %v710_v3  ;;  %295 = vmatprep.subr.bf16.mxu1 %v757_v0  ;;  %v717_v10 = vld [vmem:[%s968_s1 + $0x58] sm:$0xff]   ;;  %v720_v13 = vld [vmem:[%s968_s1 + $0x60] sm:$0xff]   ;;  %v723_v16 = vld [vmem:[%s968_s1 + $0x68] sm:$0xff]  }
   0x5   :  { %627 = vmatprep.subr.bf16.mxu0 %v711_v4  ;;  %v718_v11 = vld [vmem:[%s968_s1 + $0x98] sm:$0xff]   ;;  %v721_v14 = vld [vmem:[%s968_s1 + $0xa0] sm:$0xff]   ;;  %v724_v17 = vld [vmem:[%s968_s1 + $0xa8] sm:$0xff]  }
   0x6   :  { %v719_v12 = vld [vmem:[%s968_s1 + $0x18] sm:$0xff]   ;;  %v722_v15 = vld [vmem:[%s968_s1 + $0x20] sm:$0xff]   ;;  %v725_v18 = vld [vmem:[%s968_s1 + $0x28] sm:$0xff]  }
   0x7   :  { %296 = vmatpush1.bf16.msra.mxu1 %v712_v5  ;;  %v726_v19 = vld [vmem:[%s968_s1 + $0x70] sm:$0xff]   ;;  %v27_v22 = vld [vmem:[%s969_s0] sm:$0xff]  ;;  %v729_v23 = vld [vmem:[%s968_s1 + $0x78] sm:$0xff]  }
   0x8   :  { %628 = vmatpush3.bf16.msra.mxu0 %v713_v6  ;;  %297 = vmatprep.subr.bf16.mxu1 %v757_v0  ;;  %v727_v20 = vld [vmem:[%s968_s1 + $0xb0] sm:$0xff]   ;;  %v578_v24 = vcombine.high %v27_v22, %v27_v22  ;;  %v28_v25 = vld [vmem:[%s969_s0 + $0x8] sm:$0xff]  ;;  %v730_v27 = vld [vmem:[%s968_s1 + $0xb8] sm:$0xff]   ;;  %v577_v30 = vcombine.low %v27_v22, %v27_v22 }
   0x9   :  { %629 = vmatprep.subr.bf16.mxu0 %v714_v7  ;;  %v728_v21 = vld [vmem:[%s968_s1 + $0x30] sm:$0xff]   ;;  %v580_v26 = vcombine.high %v28_v25, %v28_v25  ;;  %v731_v28 = vld [vmem:[%s968_s1 + $0x38] sm:$0xff]   ;;  %v734_v29 = vld [vmem:[%s968_s1 + $0xc0] sm:$0xff]   ;;  %v579_v33 = vcombine.low %v28_v25, %v28_v25 }
   0xa   :  { %285 = vmatprep.mubr.bf16.mxu0 %v578_v24  ;;  %v737_v31 = vld [vmem:[%s970_s3] sm:$0xff]   ;;  %v738_v34 = vld [vmem:[%s970_s3 + $0x8] sm:$0xff]   ;;  %v739_v35 = vld [vmem:[%s970_s3 + $0x10] sm:$0xff]  }
   0xb   :  { %298 = vmatpush1.bf16.msra.mxu1 %v715_v8  ;;  %606 = vmatprep.mubr.msk.bf16.mxu1 %vm249_vm0, %v580_v26  ;;  %v740_v36 = vld [vmem:[%s970_s3 + $0x18] sm:$0xff]   ;;  %v741_v37 = vld [vmem:[%s970_s3 + $0x20] sm:$0xff]   ;;  %v742_v38 = vld [vmem:[%s970_s3 + $0x28] sm:$0xff]  }
   0xc   :  { %630 = vmatpush3.bf16.msra.mxu0 %v716_v9  ;;  %299 = vmatprep.subr.bf16.mxu1 %v757_v0  ;;  %v743_v39 = vld [vmem:[%s970_s3 + $0x30] sm:$0xff]   ;;  %v744_v40 = vld [vmem:[%s970_s3 + $0x38] sm:$0xff]   ;;  %v745_v41 = vld [vmem:[%s971_s5] sm:$0xff]  }
   0xd   :  { %631 = vmatprep.subr.bf16.mxu0 %v717_v10  ;;  %v746_v42 = vld [vmem:[%s971_s5 + $0x8] sm:$0xff]   ;;  %v747_v43 = vld [vmem:[%s971_s5 + $0x10] sm:$0xff]   ;;  %v748_v44 = vld [vmem:[%s971_s5 + $0x18] sm:$0xff]  }
   0xe   :  { %v749_v45 = vld [vmem:[%s971_s5 + $0x20] sm:$0xff]   ;;  %v750_v46 = vld [vmem:[%s971_s5 + $0x28] sm:$0xff]   ;;  %v751_v61 = vld [vmem:[%s971_s5 + $0x30] sm:$0xff]  }
   0xf   :  { %300 = vmatpush1.bf16.msra.mxu1 %v718_v11  ;;  %v576_v49 = vld [vmem:[%s972_s2] ss:$0 sm:$0xff]  ;;  %v752_v62 = vld [vmem:[%s971_s5 + $0x38] sm:$0xff]  }
  0x10   :  { %632 = vmatpush3.bf16.msra.mxu0 %v719_v12  ;;  %301 = vmatprep.subr.bf16.mxu1 %v757_v0  ;;  %v607_v63 = vld [vmem:[%s973_s4] ss:$0 sm:$0xff] }
  0x11   :  { %633 = vmatprep.subr.bf16.mxu0 %v720_v13  ;;  %v616_v7 = vld [vmem:[%s974_s6] ss:$0 sm:$0xff] }
  0x13   :  { %302 = vmatpush1.bf16.msra.mxu1 %v721_v14 }
  0x14   :  { %634 = vmatpush3.bf16.msra.mxu0 %v722_v15  ;;  %303 = vmatprep.subr.bf16.mxu1 %v757_v0 }
  0x15   :  { %635 = vmatprep.subr.bf16.mxu0 %v723_v16 }
  0x17   :  { %304 = vmatpush1.bf16.msra.mxu1 %v724_v17 }
  0x18   :  { %636 = vmatpush3.bf16.msra.mxu0 %v725_v18  ;;  %305 = vmatprep.subr.bf16.mxu1 %v757_v0 }
  0x19   :  { %637 = vmatprep.subr.bf16.mxu0 %v726_v19 }
  0x1b   :  { %306 = vmatpush1.bf16.msra.mxu1 %v727_v20 }
  0x1c   :  { %638 = vmatpush3.bf16.msra.mxu0 %v728_v21  ;;  %307 = vmatprep.subr.bf16.mxu1 %v757_v0 }
  0x1d   :  { %639 = vmatprep.subr.bf16.mxu0 %v729_v23 }
  0x1f   :  { %308 = vmatpush1.bf16.msra.mxu1 %v730_v27 }
  0x20   :  { %640 = vmatpush3.bf16.msra.mxu0 %v731_v28  ;;  %309 = vmatprep.subr.bf16.mxu1 %v757_v0 }
  0x21   :  { %665 = vmatprep.subr.bf16.mxu0 %v758_v32 }
  0x23   :  { %286 = vmatmul.mubr.bf16.vlgmr.msra.gmra.mrb[0].mxu0 %v577_v30  ;;  %310 = vmatpush1.bf16.msra.mxu1 %v734_v29 }
  0x24   :  { %666 = vmatpush3.bf16.msra.mxu0 %v737_v31  ;;  %685 = vmatprep.subr.bf16.mxu1 %v758_v32 }
  0x25   :  { %667 = vmatprep.subr.bf16.mxu0 %v758_v32  ;;  %681 = vmatprep.mubr.msk.bf16.mxu0 %vm759_vm1, %v758_v32 }
  0x26   :  { %326 = vmatmul.mubr.bf16.vlgmr.msra.gmra.mrb[0].mxu1 %v579_v33 }
  0x27   :  { %701 = vmatprep.mubr.msk.bf16.mxu1 %vm759_vm1, %v758_v32  ;;  %686 = vmatpush3.bf16.msra.mxu1 %v745_v41 }
  0x28   :  { %668 = vmatpush3.bf16.msra.mxu0 %v738_v34  ;;  %687 = vmatprep.subr.bf16.mxu1 %v758_v32 }
  0x29   :  { %669 = vmatprep.subr.bf16.mxu0 %v758_v32 }
  0x2b   :  { %688 = vmatpush3.bf16.msra.mxu1 %v746_v42 }
  0x2c   :  { %670 = vmatpush3.bf16.msra.mxu0 %v739_v35  ;;  %689 = vmatprep.subr.bf16.mxu1 %v758_v32 }
  0x2d   :  { %671 = vmatprep.subr.bf16.mxu0 %v758_v32 }
  0x2f   :  { %690 = vmatpush3.bf16.msra.mxu1 %v747_v43 }
  0x30   :  { %672 = vmatpush3.bf16.msra.mxu0 %v740_v36  ;;  %691 = vmatprep.subr.bf16.mxu1 %v758_v32 }
  0x31   :  { %673 = vmatprep.subr.bf16.mxu0 %v758_v32 }
  0x33   :  { %692 = vmatpush3.bf16.msra.mxu1 %v748_v44 }
  0x34   :  { %674 = vmatpush3.bf16.msra.mxu0 %v741_v37  ;;  %693 = vmatprep.subr.bf16.mxu1 %v758_v32 }
  0x35   :  { %675 = vmatprep.subr.bf16.mxu0 %v758_v32 }
  0x37   :  { %694 = vmatpush3.bf16.msra.mxu1 %v749_v45 }
  0x38   :  { %676 = vmatpush3.bf16.msra.mxu0 %v742_v38  ;;  %695 = vmatprep.subr.bf16.mxu1 %v758_v32 }
  0x39   :  { %677 = vmatprep.subr.bf16.mxu0 %v758_v32 }
  0x3b   :  { %696 = vmatpush3.bf16.msra.mxu1 %v750_v46 }
  0x3c   :  { %678 = vmatpush3.bf16.msra.mxu0 %v743_v39  ;;  %697 = vmatprep.subr.bf16.mxu1 %v758_v32 }
  0x3d   :  { %679 = vmatprep.subr.bf16.mxu0 %v758_v32 }
  0x3f   :  { %698 = vmatpush3.bf16.msra.mxu1 %v751_v61 }
  0x40   :  { %680 = vmatpush3.bf16.msra.mxu0 %v744_v40  ;;  %699 = vmatprep.subr.bf16.mxu1 %v758_v32 }
  0x43   :  { %700 = vmatpush3.bf16.msra.mxu1 %v752_v62 }
  0xf6   :  { %v641_v47 = vpop.f32.mrb[0].mxu0 }
  0xf7   :  { %v642_v48 = vpop.f32.mrb[1].mxu0 }
  0xf8   :  { %v643_v50 = vadd.f32 %v642_v48, %v641_v47  ;;  %v644_v51 = vpop.f32.mrb[2].mxu0 }
  0xf9   :  { %v645_v52 = vpop.f32.mrb[3].mxu0  ;;  %v327_v53 = vpop.f32.mrb[0].mxu1 }
  0xfa   :  { %v288_v54 = vadd.f32 %v643_v50, %v576_v49  ;;  %v329_v55 = vpop.f32.mrb[1].mxu1 }
  0xfb   :  { %v330_v56 = vpop.f32.mrb[2].mxu1 }
  0xfc   :  { %v328_v57 = vadd.f32 %v327_v53, %v288_v54  ;;  %v331_v58 = vpop.f32.mrb[3].mxu1 }
  0xfe   :  { %v333_v59 = vmax.f32 %v328_v57, 0.0 }
 0x100   :  { %v334_v60 = vpack.c.bf16 %v333_v59, %v333_v59 }
 0x102   :  { %682 = vmatmul.mubr.bf16.vlgmr.msra.gmra.mrb[4].mxu0 %v334_v60 }
 0x1d5   :  { %v440_v0 = vpop.f32.mrb[4].mxu0 }
 0x1d6   :  { %v441_v1 = vadd.f32 %v607_v63, %v440_v0  ;;  %v683_v2 = vpop.f32.mrb[5].mxu0 }
 0x1d7   :  { %v443_v3 = vpop.f32.mrb[6].mxu0 }
 0x1d8   :  { %v446_v4 = vmax.f32 %v441_v1, 0.0  ;;  %v684_v5 = vpop.f32.mrb[7].mxu0 }
 0x1da   :  { %v447_v6 = vpack.c.bf16 %v446_v4, %v446_v4 }
 0x1dc   :  { %702 = vmatmul.mubr.bf16.vlgmr.msra.gmra.mrb[4].mxu1 %v447_v6 }
 0x2af   :  { %v553_v8 = vpop.f32.mrb[4].mxu1 }
 0x2b0   :  { %v554_v9 = vadd.f32 %v616_v7, %v553_v8  ;;  %v703_v10 = vpop.f32.mrb[5].mxu1 }
 0x2b1   :  { %v556_v11 = vpop.f32.mrb[6].mxu1 }
 0x2b2   :  { %559 = vmax.xlane.f32.xlu0 %v554_v9  ;;  %v704_v12 = vpop.f32.mrb[7].mxu1 }
 0x33f   :  { %v560_v13 = vpop.xlane.xlu0 %559 }
 0x340   :  { %v561_v14 = vsub.f32 %v554_v9, %v560_v13 }
 0x342   :  { %v562_v15 = vmul.f32 1.442695, %v561_v14 }
 0x344   :  { %753 = vpow2.f32 %v562_v15 }
 0x34e   :  { %v754_v16 = vpop.eup %753 }
 0x34f   :  { %564 = vadd.xlane.f32.xlu0 %v754_v16 }
 0x3dc   :  { %v565_v17 = vpop.xlane.xlu0 %564 }
 0x3dd   :  { %755 = vrcp.f32 %v565_v17 }
 0x3e7   :  { %v756_v18 = vpop.eup %755 }
 0x3e8   :  { %v567_v19 = vmul.f32 %v756_v18, %v565_v17 }
 0x3ea   :  { %v568_v20 = vsub.f32 2.0, %v567_v19 }
 0x3ec   :  { %v569_v21 = vmul.f32 %v756_v18, %v568_v20 }
 0x3ee   :  { %v570_v22 = vmul.f32 %v754_v16, %v569_v21 }
 0x3f0   :  { %571 = vst [vmem:[%s975_s7] sm:$0xff] %v570_v22 }

</bundles_post_ra>
